<compile_context>
chip_gen: v7x
topology: tpu7x:2x2x1
jax: 0.10.0
libtpu: 0.0.40
codegen_flags: <defaults>
</compile_context>

<pallas_src>
import functools
import math

import jax
import jax.numpy as jnp
from jax.experimental import pallas as pl
from jax.experimental.pallas import tpu as pltpu


# MXU operand dtype (f32 accumulation everywhere).  Set to jnp.float32 for
# bit-exact f32 matmuls.
MM_DTYPE = jnp.bfloat16

# Raised scoped-VMEM limit (safe on v5e/v6e/v7x; tiles below stay well under it).
VMEM_LIMIT = 32 * 1024 * 1024

# Target tile sizes (shrunk automatically to divisors of the actual dims).
TM, TN, TK, TF = 256, 256, 512, 512


def _choose_tile(dim, target):
    """Largest divisor of `dim` that is <= target."""
    if dim <= target:
        return dim
    for t in range(target, 0, -1):
        if dim % t == 0:
            return t
    return dim


# ---------------------------------------------------------------------------
# Pallas kernels
# ---------------------------------------------------------------------------

def _linear_kernel(x_ref, w_ref, b_ref, o_ref, acc_ref, *, relu):
    """Tiled matmul: grid (M/tm, N/tn, K/tk), f32 accumulator, bias(+ReLU) epilogue."""
    k = pl.program_id(2)

    @pl.when(k == 0)
    def _():
        acc_ref[...] = jnp.zeros_like(acc_ref)

    acc_ref[...] += jnp.dot(
        x_ref[...].astype(MM_DTYPE), w_ref[...].astype(MM_DTYPE),
        preferred_element_type=jnp.float32)

    @pl.when(k == pl.num_programs(2) - 1)
    def _():
        y = acc_ref[...] + b_ref[...]
        if relu:
            y = jnp.maximum(y, 0.0)
        o_ref[...] = y.astype(o_ref.dtype)


def _matmul_resid_ln_kernel(x_ref, w_ref, b_ref, res_ref, g_ref, beta_ref,
                            o_ref, acc_ref, *, eps):
    """y = x @ W + b ; then (residual + y) -> LayerNorm, fused as the epilogue."""
    k = pl.program_id(1)

    @pl.when(k == 0)
    def _():
        acc_ref[...] = jnp.zeros_like(acc_ref)

    acc_ref[...] += jnp.dot(
        x_ref[...].astype(MM_DTYPE), w_ref[...].astype(MM_DTYPE),
        preferred_element_type=jnp.float32)

    @pl.when(k == pl.num_programs(1) - 1)
    def _():
        z = acc_ref[...] + b_ref[...] + res_ref[...].astype(jnp.float32)
        mu = jnp.mean(z, axis=-1, keepdims=True)
        var = jnp.mean((z - mu) * (z - mu), axis=-1, keepdims=True)
        inv = jax.lax.rsqrt(var + eps)
        o_ref[...] = ((z - mu) * inv * g_ref[...] + beta_ref[...]).astype(o_ref.dtype)


def _ffn_resid_ln_kernel(x_ref, w1_ref, b1_ref, w2_ref, b2_ref, res_ref,
                         g_ref, beta_ref, o_ref, acc_ref, *, eps):
    """Fused FFN: relu(x@W1+b1)@W2 accumulated over hidden-dim tiles;
    epilogue adds b2 + residual and applies LayerNorm."""
    f = pl.program_id(1)

    @pl.when(f == 0)
    def _():
        acc_ref[...] = jnp.zeros_like(acc_ref)

    h = jnp.dot(x_ref[...].astype(MM_DTYPE), w1_ref[...].astype(MM_DTYPE),
                preferred_element_type=jnp.float32) + b1_ref[...]
    h = jnp.maximum(h, 0.0)
    # dropout skipped (eval mode)
    acc_ref[...] += jnp.dot(h.astype(MM_DTYPE), w2_ref[...].astype(MM_DTYPE),
                            preferred_element_type=jnp.float32)

    @pl.when(f == pl.num_programs(1) - 1)
    def _():
        z = acc_ref[...] + b2_ref[...] + res_ref[...].astype(jnp.float32)
        mu = jnp.mean(z, axis=-1, keepdims=True)
        var = jnp.mean((z - mu) * (z - mu), axis=-1, keepdims=True)
        inv = jax.lax.rsqrt(var + eps)
        o_ref[...] = ((z - mu) * inv * g_ref[...] + beta_ref[...]).astype(o_ref.dtype)


def _attn_core(q, k, v, o_ref, p_ref, num_heads, scale):
    """Scaled-dot-product attention for one batch element, all heads.
    q: (Sq, D), k/v: (Sk, D) loaded f32 values.  Writes ctx (lane-dense (Sq, D))
    and per-head probs."""
    sq, d = q.shape
    hd = d // num_heads
    ctx_parts = []
    for h in range(num_heads):
        qh = q[:, h * hd:(h + 1) * hd]
        kh = k[:, h * hd:(h + 1) * hd]
        vh = v[:, h * hd:(h + 1) * hd]
        # contract over the head dim directly -- no in-kernel transpose of K.
        s = jax.lax.dot_general(
            qh.astype(MM_DTYPE), kh.astype(MM_DTYPE),
            dimension_numbers=(((1,), (1,)), ((), ())),
            preferred_element_type=jnp.float32) * scale
        # TODO(synk): attention mask would be added to `s` here.
        m = jnp.max(s, axis=-1, keepdims=True)
        e = jnp.exp(s - m)
        denom = jnp.sum(e, axis=-1, keepdims=True)
        p = e * pl.reciprocal(denom, approx=True)
        p_ref[0, h] = p.astype(p_ref.dtype)
        ctx_parts.append(
            jnp.dot(p.astype(MM_DTYPE), vh.astype(MM_DTYPE),
                    preferred_element_type=jnp.float32))
    # single lane-dense (Sq, D) store for the context
    o_ref[0] = jnp.concatenate(ctx_parts, axis=-1).astype(o_ref.dtype)


def _self_attn_kernel(qkv_ref, o_ref, p_ref, *, num_heads, scale, d):
    qkv = qkv_ref[0]                     # (Sq, 3D) — fused Q|K|V projection
    _attn_core(qkv[:, :d], qkv[:, d:2 * d], qkv[:, 2 * d:],
               o_ref, p_ref, num_heads, scale)


def _cross_attn_kernel(q_ref, kv_ref, o_ref, p_ref, *, num_heads, scale, d):
    kv = kv_ref[0]                       # (Sk, 2D) — fused K|V projection
    _attn_core(q_ref[0], kv[:, :d], kv[:, d:], o_ref, p_ref, num_heads, scale)


# ---------------------------------------------------------------------------
# Pallas wrappers
# ---------------------------------------------------------------------------

def pallas_linear(x2d, w, b, relu=False):
    M, K = x2d.shape
    N = w.shape[1]
    tm, tn, tk = _choose_tile(M, TM), _choose_tile(N, TN), _choose_tile(K, TK)
    grid = (M // tm, N // tn, K // tk)
    return pl.pallas_call(
        functools.partial(_linear_kernel, relu=relu),
        out_shape=jax.ShapeDtypeStruct((M, N), jnp.float32),
        grid_spec=pltpu.PrefetchScalarGridSpec(
            num_scalar_prefetch=0,
            grid=grid,
            in_specs=[
                pl.BlockSpec((tm, tk), lambda i, j, k: (i, k)),
                pl.BlockSpec((tk, tn), lambda i, j, k: (k, j)),
                pl.BlockSpec((1, tn), lambda i, j, k: (0, j)),
            ],
            out_specs=pl.BlockSpec((tm, tn), lambda i, j, k: (i, j)),
            scratch_shapes=[pltpu.VMEM((tm, tn), jnp.float32)]),
        compiler_params=pltpu.CompilerParams(
            dimension_semantics=("parallel", "parallel", "arbitrary"),
            vmem_limit_bytes=VMEM_LIMIT),
    )(x2d, w, b.reshape(1, N))


def pallas_matmul_resid_ln(x2d, w, b, res2d, gamma, beta, eps):
    M, K = x2d.shape
    D = w.shape[1]
    tm, tk = _choose_tile(M, TM), _choose_tile(K, TK)
    grid = (M // tm, K // tk)
    return pl.pallas_call(
        functools.partial(_matmul_resid_ln_kernel, eps=eps),
        out_shape=jax.ShapeDtypeStruct((M, D), jnp.float32),
        grid_spec=pltpu.PrefetchScalarGridSpec(
            num_scalar_prefetch=0,
            grid=grid,
            in_specs=[
                pl.BlockSpec((tm, tk), lambda i, k: (i, k)),   # x
                pl.BlockSpec((tk, D), lambda i, k: (k, 0)),    # W
                pl.BlockSpec((1, D), lambda i, k: (0, 0)),     # bias
                pl.BlockSpec((tm, D), lambda i, k: (i, 0)),    # residual
                pl.BlockSpec((1, D), lambda i, k: (0, 0)),     # gamma
                pl.BlockSpec((1, D), lambda i, k: (0, 0)),     # beta
            ],
            out_specs=pl.BlockSpec((tm, D), lambda i, k: (i, 0)),
            scratch_shapes=[pltpu.VMEM((tm, D), jnp.float32)]),
        compiler_params=pltpu.CompilerParams(
            dimension_semantics=("parallel", "arbitrary"),
            vmem_limit_bytes=VMEM_LIMIT),
    )(x2d, w, b.reshape(1, D), res2d, gamma.reshape(1, D), beta.reshape(1, D))


def pallas_ffn_resid_ln(x2d, w1, b1, w2, b2, res2d, gamma, beta, eps):
    M, D = x2d.shape
    F = w1.shape[1]
    tm, tf = _choose_tile(M, TM), _choose_tile(F, TF)
    grid = (M // tm, F // tf)
    return pl.pallas_call(
        functools.partial(_ffn_resid_ln_kernel, eps=eps),
        out_shape=jax.ShapeDtypeStruct((M, D), jnp.float32),
        grid_spec=pltpu.PrefetchScalarGridSpec(
            num_scalar_prefetch=0,
            grid=grid,
            in_specs=[
                pl.BlockSpec((tm, D), lambda i, f: (i, 0)),    # x
                pl.BlockSpec((D, tf), lambda i, f: (0, f)),    # W1
                pl.BlockSpec((1, tf), lambda i, f: (0, f)),    # b1
                pl.BlockSpec((tf, D), lambda i, f: (f, 0)),    # W2
                pl.BlockSpec((1, D), lambda i, f: (0, 0)),     # b2
                pl.BlockSpec((tm, D), lambda i, f: (i, 0)),    # residual
                pl.BlockSpec((1, D), lambda i, f: (0, 0)),     # gamma
                pl.BlockSpec((1, D), lambda i, f: (0, 0)),     # beta
            ],
            out_specs=pl.BlockSpec((tm, D), lambda i, f: (i, 0)),
            scratch_shapes=[pltpu.VMEM((tm, D), jnp.float32)]),
        compiler_params=pltpu.CompilerParams(
            dimension_semantics=("parallel", "arbitrary"),
            vmem_limit_bytes=VMEM_LIMIT),
    )(x2d, w1, b1.reshape(1, F), w2, b2.reshape(1, D), res2d,
      gamma.reshape(1, D), beta.reshape(1, D))


def pallas_self_attention(qkv, num_heads, d):
    B, Sq, _ = qkv.shape
    hd = d // num_heads
    scale = 1.0 / math.sqrt(hd)
    return pl.pallas_call(
        functools.partial(_self_attn_kernel, num_heads=num_heads, scale=scale, d=d),
        grid=(B,),
        out_shape=(
            jax.ShapeDtypeStruct((B, Sq, d), jnp.float32),
            jax.ShapeDtypeStruct((B, num_heads, Sq, Sq), jnp.float32),
        ),
        in_specs=[pl.BlockSpec((1, Sq, 3 * d), lambda b: (b, 0, 0))],
        out_specs=(
            pl.BlockSpec((1, Sq, d), lambda b: (b, 0, 0)),
            pl.BlockSpec((1, num_heads, Sq, Sq), lambda b: (b, 0, 0, 0)),
        ),
        compiler_params=pltpu.CompilerParams(
            dimension_semantics=("parallel",),
            vmem_limit_bytes=VMEM_LIMIT),
    )(qkv)


def pallas_cross_attention(q, kv, num_heads, d):
    B, Sq, _ = q.shape
    Sk = kv.shape[1]
    hd = d // num_heads
    scale = 1.0 / math.sqrt(hd)
    return pl.pallas_call(
        functools.partial(_cross_attn_kernel, num_heads=num_heads, scale=scale, d=d),
        grid=(B,),
        out_shape=(
            jax.ShapeDtypeStruct((B, Sq, d), jnp.float32),
            jax.ShapeDtypeStruct((B, num_heads, Sq, Sk), jnp.float32),
        ),
        in_specs=[
            pl.BlockSpec((1, Sq, d), lambda b: (b, 0, 0)),
            pl.BlockSpec((1, Sk, 2 * d), lambda b: (b, 0, 0)),
        ],
        out_specs=(
            pl.BlockSpec((1, Sq, d), lambda b: (b, 0, 0)),
            pl.BlockSpec((1, num_heads, Sq, Sk), lambda b: (b, 0, 0, 0)),
        ),
        compiler_params=pltpu.CompilerParams(
            dimension_semantics=("parallel",),
            vmem_limit_bytes=VMEM_LIMIT),
    )(q, kv)


# ---------------------------------------------------------------------------
# DecoderLayer forward (composed from the Pallas kernels)
# ---------------------------------------------------------------------------

def decoder_layer_forward(params, dec_inputs, enc_inputs, num_heads, eps):
    B, Sd, D = dec_inputs.shape
    Se = enc_inputs.shape[1]
    dec2d = dec_inputs.reshape(B * Sd, D)
    enc2d = enc_inputs.reshape(B * Se, D)

    # ---- self-attention (fused QKV proj) + [out-proj + residual + norm1] ----
    sa = params["self_attn"]
    qkv = pallas_linear(dec2d, sa["wqkv"], sa["bqkv"]).reshape(B, Sd, 3 * D)
    ctx, sa_prob = pallas_self_attention(qkv, num_heads, D)
    x1 = pallas_matmul_resid_ln(
        ctx.reshape(B * Sd, D), sa["wo"], sa["bo"], dec2d,
        params["norm1_g"], params["norm1_b"], eps)          # (B*Sd, D)

    # ---- cross-attention (fused KV proj) + [out-proj + residual + norm2] ----
    ca = params["cross_attn"]
    q = pallas_linear(x1, ca["wq"], ca["bq"]).reshape(B, Sd, D)
    kv = pallas_linear(enc2d, ca["wkv"], ca["bkv"]).reshape(B, Se, 2 * D)
    ctx2, ca_prob = pallas_cross_attention(q, kv, num_heads, D)
    x2 = pallas_matmul_resid_ln(
        ctx2.reshape(B * Sd, D), ca["wo"], ca["bo"], x1,
        params["norm2_g"], params["norm2_b"], eps)           # (B*Sd, D)

    # ---- fused FFN + residual + norm3 ----
    ffn = params["ffn"]
    x3 = pallas_ffn_resid_ln(
        x2, ffn["w1"], ffn["b1"], ffn["w2"], ffn["b2"], x2,
        params["norm3_g"], params["norm3_b"], eps)           # (B*Sd, D)

    return x3.reshape(B, Sd, D), sa_prob, ca_prob


# ---------------------------------------------------------------------------
# Pure-JAX reference (for a sanity check on semantics)
# ---------------------------------------------------------------------------

def reference_forward(params, dec, enc, num_heads, eps):
    def layer_norm(x, g, b):
        mu = jnp.mean(x, -1, keepdims=True)
        var = jnp.mean((x - mu) ** 2, -1, keepdims=True)
        return (x - mu) * jax.lax.rsqrt(var + eps) * g + b

    def mha(q_in, kv_in, wq, bq, wk, bk, wv, bv, wo, bo):
        B, Sq, D = q_in.shape
        Sk = kv_in.shape[1]
        hd = D // num_heads
        q = (q_in @ wq + bq).reshape(B, Sq, num_heads, hd).transpose(0, 2, 1, 3)
        k = (kv_in @ wk + bk).reshape(B, Sk, num_heads, hd).transpose(0, 2, 1, 3)
        v = (kv_in @ wv + bv).reshape(B, Sk, num_heads, hd).transpose(0, 2, 1, 3)
        s = jnp.einsum("bhqd,bhkd->bhqk", q, k) / math.sqrt(hd)
        p = jax.nn.softmax(s, axis=-1)
        ctx = jnp.einsum("bhqk,bhkd->bhqd", p, v).transpose(0, 2, 1, 3).reshape(B, Sq, D)
        return ctx @ wo + bo, p

    D = dec.shape[-1]
    sa = params["self_attn"]
    wq, wk, wv = sa["wqkv"][:, :D], sa["wqkv"][:, D:2 * D], sa["wqkv"][:, 2 * D:]
    bq, bk, bv = sa["bqkv"][:D], sa["bqkv"][D:2 * D], sa["bqkv"][2 * D:]
    sa_out, sa_p = mha(dec, dec, wq, bq, wk, bk, wv, bv, sa["wo"], sa["bo"])
    x1 = layer_norm(dec + sa_out, params["norm1_g"], params["norm1_b"])

    ca = params["cross_attn"]
    wkc, wvc = ca["wkv"][:, :D], ca["wkv"][:, D:]
    bkc, bvc = ca["bkv"][:D], ca["bkv"][D:]
    ca_out, ca_p = mha(x1, enc, ca["wq"], ca["bq"], wkc, bkc, wvc, bvc,
                       ca["wo"], ca["bo"])
    x2 = layer_norm(x1 + ca_out, params["norm2_g"], params["norm2_b"])

    ffn = params["ffn"]
    h = jnp.maximum(x2 @ ffn["w1"] + ffn["b1"], 0.0)
    f = h @ ffn["w2"] + ffn["b2"]
    x3 = layer_norm(x2 + f, params["norm3_g"], params["norm3_b"])
    return x3, sa_p, ca_p


# ---------------------------------------------------------------------------
# Deterministic parameter init
# ---------------------------------------------------------------------------

def init_params(key, embed_dim, ffn_dim):
    keys = jax.random.split(key, 8)
    std = 0.02

    def lin(k, din, dout):
        return (jax.random.normal(k, (din, dout), jnp.float32) * std,
                jnp.zeros((dout,), jnp.float32))

    wqkv, bqkv = lin(keys[0], embed_dim, 3 * embed_dim)     # fused Q|K|V
    wo_s, bo_s = lin(keys[1], embed_dim, embed_dim)
    wq_c, bq_c = lin(keys[2], embed_dim, embed_dim)
    wkv_c, bkv_c = lin(keys[3], embed_dim, 2 * embed_dim)   # fused K|V
    wo_c, bo_c = lin(keys[4], embed_dim, embed_dim)
    w1, b1 = lin(keys[5], embed_dim, ffn_dim)
    w2, b2 = lin(keys[6], ffn_dim, embed_dim)

    return dict(
        self_attn=dict(wqkv=wqkv, bqkv=bqkv, wo=wo_s, bo=bo_s),
        cross_attn=dict(wq=wq_c, bq=bq_c, wkv=wkv_c, bkv=bkv_c, wo=wo_c, bo=bo_c),
        ffn=dict(w1=w1, b1=b1, w2=w2, b2=b2),
        norm1_g=jnp.ones((embed_dim,), jnp.float32),
        norm1_b=jnp.zeros((embed_dim,), jnp.float32),
        norm2_g=jnp.ones((embed_dim,), jnp.float32),
        norm2_b=jnp.zeros((embed_dim,), jnp.float32),
        norm3_g=jnp.ones((embed_dim,), jnp.float32),
        norm3_b=jnp.zeros((embed_dim,), jnp.float32),
    )


# ---------------------------------------------------------------------------
# Main
# ---------------------------------------------------------------------------

if __name__ == "__main__":
    # Small, forward-consistent shapes.
    B, S_DEC, S_ENC = 2, 8, 8
    EMBED_DIM, FFN_DIM, NUM_HEADS, EPS = 32, 64, 4, 1e-5

    key = jax.random.PRNGKey(0)
    k_params, k_dec, k_enc = jax.random.split(key, 3)

    params = init_params(k_params, EMBED_DIM, FFN_DIM)
    dec_inputs = jax.random.normal(k_dec, (B, S_DEC, EMBED_DIM), jnp.float32)
    enc_inputs = jax.random.normal(k_enc, (B, S_ENC, EMBED_DIM), jnp.float32)

    fwd = jax.jit(functools.partial(
        decoder_layer_forward, num_heads=NUM_HEADS, eps=EPS))
    out, self_prob, cross_prob = fwd(params, dec_inputs, enc_inputs)
    jax.block_until_ready((out, self_prob, cross_prob))

    assert out.shape == (B, S_DEC, EMBED_DIM)
    assert self_prob.shape == (B, NUM_HEADS, S_DEC, S_DEC)
    assert cross_prob.shape == (B, NUM_HEADS, S_DEC, S_ENC)
    assert bool(jnp.all(jnp.isfinite(out)))

    # Loose sanity check against a pure-JAX f32 reference (kernels use bf16 MXU
    # operands + approx reciprocal, so tolerance is generous).
    ref_out, ref_sp, ref_cp = reference_forward(
        params, dec_inputs, enc_inputs, NUM_HEADS, EPS)
    assert float(jnp.max(jnp.abs(out - ref_out))) < 1e-1
    assert float(jnp.max(jnp.abs(self_prob - ref_sp))) < 1e-1
    assert float(jnp.max(jnp.abs(cross_prob - ref_cp))) < 1e-1

    print("KERNEL_OK")
</pallas_src>

<mosaic_0001>
module attributes {stable_mosaic.version = 11 : i64} {
  func.func @_matmul_resid_ln_kernel(%arg0: i32, %arg1: i32, %arg2: memref<16x32xf32, #tpu.memory_space<vmem>>, %arg3: memref<32x32xf32, #tpu.memory_space<vmem>>, %arg4: memref<1x32xf32, #tpu.memory_space<vmem>>, %arg5: memref<16x32xf32, #tpu.memory_space<vmem>>, %arg6: memref<1x32xf32, #tpu.memory_space<vmem>>, %arg7: memref<1x32xf32, #tpu.memory_space<vmem>>, %arg8: memref<16x32xf32, #tpu.memory_space<vmem>>, %arg9: memref<16x32xf32, #tpu.memory_space<vmem>>) attributes {dimension_semantics = [#tpu.dimension_semantics<parallel>, #tpu.dimension_semantics<arbitrary>], iteration_bounds = array<i64: 1, 1>, scalar_prefetch = 0 : i64, scratch_operands = 1 : i64, tpu.core_type = #tpu.core_type<tc>, window_params = [{transform_indices = @transform_0, window_bounds = array<i64: 16, 32>}, {transform_indices = @transform_1, window_bounds = array<i64: 32, 32>}, {pipeline_mode = #tpu.pipeline_mode<synchronous>, transform_indices = @transform_2, window_bounds = array<i64: 1, 32>}, {transform_indices = @transform_3, window_bounds = array<i64: 16, 32>}, {pipeline_mode = #tpu.pipeline_mode<synchronous>, transform_indices = @transform_4, window_bounds = array<i64: 1, 32>}, {pipeline_mode = #tpu.pipeline_mode<synchronous>, transform_indices = @transform_5, window_bounds = array<i64: 1, 32>}, {transform_indices = @transform_6, window_bounds = array<i64: 16, 32>}]} {
    %c0_i32 = arith.constant 0 : i32
    %0 = arith.cmpi eq, %arg1, %c0_i32 : i32
    %1 = arith.extui %0 : i1 to i32
    %c0_i32_0 = arith.constant 0 : i32
    %2 = arith.cmpi ne, %1, %c0_i32_0 : i32
    scf.if %2 {
      %cst_10 = arith.constant 0.000000e+00 : f32
      %14 = vector.broadcast %cst_10 : f32 to vector<16x32xf32>
      %c0_11 = arith.constant 0 : index
      %c0_12 = arith.constant 0 : index
      %15 = vector.load %arg9[%c0_11, %c0_12] : memref<16x32xf32, #tpu.memory_space<vmem>>, vector<16x32xf32>
      tpu.vector_store %arg9[%c0_11, %c0_12], %14 {strides = array<i32>} : memref<16x32xf32, #tpu.memory_space<vmem>>, vector<16x32xf32>,
    } else {
    }
    %c0 = arith.constant 0 : index
    %c0_1 = arith.constant 0 : index
    %3 = vector.load %arg9[%c0, %c0_1] : memref<16x32xf32, #tpu.memory_space<vmem>>, vector<16x32xf32>
    %c0_2 = arith.constant 0 : index
    %c0_3 = arith.constant 0 : index
    %4 = vector.load %arg2[%c0_2, %c0_3] : memref<16x32xf32, #tpu.memory_space<vmem>>, vector<16x32xf32>
    %5 = arith.truncf %4 : vector<16x32xf32> to vector<16x32xbf16>
    %c0_4 = arith.constant 0 : index
    %c0_5 = arith.constant 0 : index
    %6 = vector.load %arg3[%c0_4, %c0_5] : memref<32x32xf32, #tpu.memory_space<vmem>>, vector<32x32xf32>
    %7 = arith.truncf %6 : vector<32x32xf32> to vector<32x32xbf16>
    %cst = arith.constant dense<0.000000e+00> : vector<16x32xf32>
    %8 = tpu.matmul %5, %7, %cst {dimension_numbers = #tpu.dot_dimension_numbers<[1], [0], [0], [1], [0, 0, 1, 1], [], []>} : vector<16x32xbf16>, vector<32x32xbf16>, vector<16x32xf32> -> vector<16x32xf32>
    %9 = arith.addf %3, %8 : vector<16x32xf32>
    %c0_6 = arith.constant 0 : index
    %c0_7 = arith.constant 0 : index
    %10 = vector.load %arg9[%c0_6, %c0_7] : memref<16x32xf32, #tpu.memory_space<vmem>>, vector<16x32xf32>
    tpu.vector_store %arg9[%c0_6, %c0_7], %9 {strides = array<i32>} : memref<16x32xf32, #tpu.memory_space<vmem>>, vector<16x32xf32>,
    %c0_i32_8 = arith.constant 0 : i32
    %11 = arith.cmpi eq, %arg1, %c0_i32_8 : i32
    %12 = arith.extui %11 : i1 to i32
    %c0_i32_9 = arith.constant 0 : i32
    %13 = arith.cmpi ne, %12, %c0_i32_9 : i32
    scf.if %13 {
      %c0_10 = arith.constant 0 : index
      %c0_11 = arith.constant 0 : index
      %14 = vector.load %arg9[%c0_10, %c0_11] : memref<16x32xf32, #tpu.memory_space<vmem>>, vector<16x32xf32>
      %c0_12 = arith.constant 0 : index
      %c0_13 = arith.constant 0 : index
      %15 = vector.load %arg4[%c0_12, %c0_13] : memref<1x32xf32, #tpu.memory_space<vmem>>, vector<1x32xf32>
      %16 = vector.broadcast %15 : vector<1x32xf32> to vector<16x32xf32>
      %17 = arith.addf %14, %16 : vector<16x32xf32>
      %c0_14 = arith.constant 0 : index
      %c0_15 = arith.constant 0 : index
      %18 = vector.load %arg5[%c0_14, %c0_15] : memref<16x32xf32, #tpu.memory_space<vmem>>, vector<16x32xf32>
      %19 = arith.addf %17, %18 : vector<16x32xf32>
      %cst_16 = arith.constant dense<0.000000e+00> : vector<16xf32>
      %20 = vector.multi_reduction <add>, %19, %cst_16 [1] : vector<16x32xf32> to vector<16xf32>
      %21 = vector.shape_cast %20 : vector<16xf32> to vector<16x1xf32>
      %cst_17 = arith.constant 3.200000e+01 : f32
      %22 = vector.broadcast %cst_17 : f32 to vector<16x1xf32>
      %23 = arith.divf %21, %22 : vector<16x1xf32>
      %24 = vector.broadcast %23 : vector<16x1xf32> to vector<16x32xf32>
      %25 = arith.subf %19, %24 : vector<16x32xf32>
      %26 = vector.broadcast %23 : vector<16x1xf32> to vector<16x32xf32>
      %27 = arith.subf %19, %26 : vector<16x32xf32>
      %28 = arith.mulf %25, %27 : vector<16x32xf32>
      %cst_18 = arith.constant dense<0.000000e+00> : vector<16xf32>
      %29 = vector.multi_reduction <add>, %28, %cst_18 [1] : vector<16x32xf32> to vector<16xf32>
      %30 = vector.shape_cast %29 : vector<16xf32> to vector<16x1xf32>
      %cst_19 = arith.constant 3.200000e+01 : f32
      %31 = vector.broadcast %cst_19 : f32 to vector<16x1xf32>
      %32 = arith.divf %30, %31 : vector<16x1xf32>
      %cst_20 = arith.constant 9.99999974E-6 : f32
      %33 = vector.broadcast %cst_20 : f32 to vector<16x1xf32>
      %34 = arith.addf %32, %33 : vector<16x1xf32>
      %35 = math.rsqrt %34 : vector<16x1xf32>
      %36 = vector.broadcast %23 : vector<16x1xf32> to vector<16x32xf32>
      %37 = arith.subf %19, %36 : vector<16x32xf32>
      %38 = vector.broadcast %35 : vector<16x1xf32> to vector<16x32xf32>
      %39 = arith.mulf %37, %38 : vector<16x32xf32>
      %c0_21 = arith.constant 0 : index
      %c0_22 = arith.constant 0 : index
      %40 = vector.load %arg6[%c0_21, %c0_22] : memref<1x32xf32, #tpu.memory_space<vmem>>, vector<1x32xf32>
      %41 = vector.broadcast %40 : vector<1x32xf32> to vector<16x32xf32>
      %42 = arith.mulf %39, %41 : vector<16x32xf32>
      %c0_23 = arith.constant 0 : index
      %c0_24 = arith.constant 0 : index
      %43 = vector.load %arg7[%c0_23, %c0_24] : memref<1x32xf32, #tpu.memory_space<vmem>>, vector<1x32xf32>
      %44 = vector.broadcast %43 : vector<1x32xf32> to vector<16x32xf32>
      %45 = arith.addf %42, %44 : vector<16x32xf32>
      %c0_25 = arith.constant 0 : index
      %c0_26 = arith.constant 0 : index
      %46 = vector.load %arg8[%c0_25, %c0_26] : memref<16x32xf32, #tpu.memory_space<vmem>>, vector<16x32xf32>
      tpu.vector_store %arg8[%c0_25, %c0_26], %45 {strides = array<i32>} : memref<16x32xf32, #tpu.memory_space<vmem>>, vector<16x32xf32>,
    } else {
    }
    return
  }
  func.func @transform_0(%arg0: i32, %arg1: i32) -> (i32, i32) {
    %c0_i32 = arith.constant 0 : i32
    return %arg0, %arg1 : i32, i32
  }
  func.func @transform_1(%arg0: i32, %arg1: i32) -> (i32, i32) {
    %c0_i32 = arith.constant 0 : i32
    %c0_i32_0 = arith.constant 0 : i32
    return %arg1, %c0_i32 : i32, i32
  }
  func.func @transform_2(%arg0: i32, %arg1: i32) -> (i32, i32) {
    %c0_i32 = arith.constant 0 : i32
    %c0_i32_0 = arith.constant 0 : i32
    %c0_i32_1 = arith.constant 0 : i32
    return %c0_i32, %c0_i32_0 : i32, i32
  }
  func.func @transform_3(%arg0: i32, %arg1: i32) -> (i32, i32) {
    %c0_i32 = arith.constant 0 : i32
    %c0_i32_0 = arith.constant 0 : i32
    return %arg0, %c0_i32 : i32, i32
  }
  func.func @transform_4(%arg0: i32, %arg1: i32) -> (i32, i32) {
    %c0_i32 = arith.constant 0 : i32
    %c0_i32_0 = arith.constant 0 : i32
    %c0_i32_1 = arith.constant 0 : i32
    return %c0_i32, %c0_i32_0 : i32, i32
  }
  func.func @transform_5(%arg0: i32, %arg1: i32) -> (i32, i32) {
    %c0_i32 = arith.constant 0 : i32
    %c0_i32_0 = arith.constant 0 : i32
    %c0_i32_1 = arith.constant 0 : i32
    return %c0_i32, %c0_i32_0 : i32, i32
  }
  func.func @transform_6(%arg0: i32, %arg1: i32) -> (i32, i32) {
    %c0_i32 = arith.constant 0 : i32
    %c0_i32_0 = arith.constant 0 : i32
    return %arg0, %c0_i32 : i32, i32
  }
}

module attributes {stable_mosaic.version = 11 : i64} {
  func.func @_linear_kernel(%arg0: i32, %arg1: i32, %arg2: i32, %arg3: memref<16x32xf32, #tpu.memory_space<vmem>>, %arg4: memref<32x32xf32, #tpu.memory_space<vmem>>, %arg5: memref<1x32xf32, #tpu.memory_space<vmem>>, %arg6: memref<16x32xf32, #tpu.memory_space<vmem>>, %arg7: memref<16x32xf32, #tpu.memory_space<vmem>>) attributes {dimension_semantics = [#tpu.dimension_semantics<parallel>, #tpu.dimension_semantics<parallel>, #tpu.dimension_semantics<arbitrary>], iteration_bounds = array<i64: 1, 1, 1>, scalar_prefetch = 0 : i64, scratch_operands = 1 : i64, tpu.core_type = #tpu.core_type<tc>, window_params = [{transform_indices = @transform_0, window_bounds = array<i64: 16, 32>}, {transform_indices = @transform_1, window_bounds = array<i64: 32, 32>}, {transform_indices = @transform_2, window_bounds = array<i64: 1, 32>}, {transform_indices = @transform_3, window_bounds = array<i64: 16, 32>}]} {
    %c0_i32 = arith.constant 0 : i32
    %0 = arith.cmpi eq, %arg2, %c0_i32 : i32
    %1 = arith.extui %0 : i1 to i32
    %c0_i32_0 = arith.constant 0 : i32
    %2 = arith.cmpi ne, %1, %c0_i32_0 : i32
    scf.if %2 {
      %cst_10 = arith.constant 0.000000e+00 : f32
      %14 = vector.broadcast %cst_10 : f32 to vector<16x32xf32>
      %c0_11 = arith.constant 0 : index
      %c0_12 = arith.constant 0 : index
      %15 = vector.load %arg7[%c0_11, %c0_12] : memref<16x32xf32, #tpu.memory_space<vmem>>, vector<16x32xf32>
      tpu.vector_store %arg7[%c0_11, %c0_12], %14 {strides = array<i32>} : memref<16x32xf32, #tpu.memory_space<vmem>>, vector<16x32xf32>,
    } else {
    }
    %c0 = arith.constant 0 : index
    %c0_1 = arith.constant 0 : index
    %3 = vector.load %arg7[%c0, %c0_1] : memref<16x32xf32, #tpu.memory_space<vmem>>, vector<16x32xf32>
    %c0_2 = arith.constant 0 : index
    %c0_3 = arith.constant 0 : index
    %4 = vector.load %arg3[%c0_2, %c0_3] : memref<16x32xf32, #tpu.memory_space<vmem>>, vector<16x32xf32>
    %5 = arith.truncf %4 : vector<16x32xf32> to vector<16x32xbf16>
    %c0_4 = arith.constant 0 : index
    %c0_5 = arith.constant 0 : index
    %6 = vector.load %arg4[%c0_4, %c0_5] : memref<32x32xf32, #tpu.memory_space<vmem>>, vector<32x32xf32>
    %7 = arith.truncf %6 : vector<32x32xf32> to vector<32x32xbf16>
    %cst = arith.constant dense<0.000000e+00> : vector<16x32xf32>
    %8 = tpu.matmul %5, %7, %cst {dimension_numbers = #tpu.dot_dimension_numbers<[1], [0], [0], [1], [0, 0, 1, 1], [], []>} : vector<16x32xbf16>, vector<32x32xbf16>, vector<16x32xf32> -> vector<16x32xf32>
    %9 = arith.addf %3, %8 : vector<16x32xf32>
    %c0_6 = arith.constant 0 : index
    %c0_7 = arith.constant 0 : index
    %10 = vector.load %arg7[%c0_6, %c0_7] : memref<16x32xf32, #tpu.memory_space<vmem>>, vector<16x32xf32>
    tpu.vector_store %arg7[%c0_6, %c0_7], %9 {strides = array<i32>} : memref<16x32xf32, #tpu.memory_space<vmem>>, vector<16x32xf32>,
    %c0_i32_8 = arith.constant 0 : i32
    %11 = arith.cmpi eq, %arg2, %c0_i32_8 : i32
    %12 = arith.extui %11 : i1 to i32
    %c0_i32_9 = arith.constant 0 : i32
    %13 = arith.cmpi ne, %12, %c0_i32_9 : i32
    scf.if %13 {
      %c0_10 = arith.constant 0 : index
      %c0_11 = arith.constant 0 : index
      %14 = vector.load %arg7[%c0_10, %c0_11] : memref<16x32xf32, #tpu.memory_space<vmem>>, vector<16x32xf32>
      %c0_12 = arith.constant 0 : index
      %c0_13 = arith.constant 0 : index
      %15 = vector.load %arg5[%c0_12, %c0_13] : memref<1x32xf32, #tpu.memory_space<vmem>>, vector<1x32xf32>
      %16 = vector.broadcast %15 : vector<1x32xf32> to vector<16x32xf32>
      %17 = arith.addf %14, %16 : vector<16x32xf32>
      %c0_14 = arith.constant 0 : index
      %c0_15 = arith.constant 0 : index
      %18 = vector.load %arg6[%c0_14, %c0_15] : memref<16x32xf32, #tpu.memory_space<vmem>>, vector<16x32xf32>
      tpu.vector_store %arg6[%c0_14, %c0_15], %17 {strides = array<i32>} : memref<16x32xf32, #tpu.memory_space<vmem>>, vector<16x32xf32>,
    } else {
    }
    return
  }
  func.func @transform_0(%arg0: i32, %arg1: i32, %arg2: i32) -> (i32, i32) {
    %c0_i32 = arith.constant 0 : i32
    return %arg0, %arg2 : i32, i32
  }
  func.func @transform_1(%arg0: i32, %arg1: i32, %arg2: i32) -> (i32, i32) {
    %c0_i32 = arith.constant 0 : i32
    return %arg2, %arg1 : i32, i32
  }
  func.func @transform_2(%arg0: i32, %arg1: i32, %arg2: i32) -> (i32, i32) {
    %c0_i32 = arith.constant 0 : i32
    %c0_i32_0 = arith.constant 0 : i32
    return %c0_i32, %arg1 : i32, i32
  }
  func.func @transform_3(%arg0: i32, %arg1: i32, %arg2: i32) -> (i32, i32) {
    %c0_i32 = arith.constant 0 : i32
    return %arg0, %arg1 : i32, i32
  }
}

module attributes {stable_mosaic.version = 11 : i64} {
  func.func @_self_attn_kernel(%arg0: i32, %arg1: memref<1x8x96xf32, #tpu.memory_space<vmem>>, %arg2: memref<1x8x32xf32, #tpu.memory_space<vmem>>, %arg3: memref<1x4x8x8xf32, #tpu.memory_space<vmem>>) attributes {dimension_semantics = [#tpu.dimension_semantics<parallel>], iteration_bounds = array<i64: 2>, scalar_prefetch = 0 : i64, scratch_operands = 0 : i64, tpu.core_type = #tpu.core_type<tc>, window_params = [{transform_indices = @transform_0, window_bounds = array<i64: 1, 8, 96>}, {transform_indices = @transform_1, window_bounds = array<i64: 1, 8, 32>}, {transform_indices = @transform_2, window_bounds = array<i64: 1, 4, 8, 8>}]} {
    %c0 = arith.constant 0 : index
    %c0_0 = arith.constant 0 : index
    %c0_1 = arith.constant 0 : index
    %0 = vector.load %arg1[%c0, %c0_0, %c0_1] : memref<1x8x96xf32, #tpu.memory_space<vmem>>, vector<1x8x96xf32>
    %1 = vector.shape_cast %0 : vector<1x8x96xf32> to vector<8x96xf32>
    %2 = vector.extract_strided_slice %1 {offsets = [0, 0], sizes = [8, 32], strides = [1, 1]} : vector<8x96xf32> to vector<8x32xf32>
    %3 = vector.extract_strided_slice %1 {offsets = [0, 32], sizes = [8, 32], strides = [1, 1]} : vector<8x96xf32> to vector<8x32xf32>
    %4 = vector.extract_strided_slice %1 {offsets = [0, 64], sizes = [8, 32], strides = [1, 1]} : vector<8x96xf32> to vector<8x32xf32>
    %5 = vector.extract_strided_slice %2 {offsets = [0, 0], sizes = [8, 8], strides = [1, 1]} : vector<8x32xf32> to vector<8x8xf32>
    %6 = vector.extract_strided_slice %3 {offsets = [0, 0], sizes = [8, 8], strides = [1, 1]} : vector<8x32xf32> to vector<8x8xf32>
    %7 = vector.extract_strided_slice %4 {offsets = [0, 0], sizes = [8, 8], strides = [1, 1]} : vector<8x32xf32> to vector<8x8xf32>
    %8 = arith.truncf %5 : vector<8x8xf32> to vector<8x8xbf16>
    %9 = arith.truncf %6 : vector<8x8xf32> to vector<8x8xbf16>
    %cst = arith.constant dense<0.000000e+00> : vector<8x8xf32>
    %10 = tpu.matmul %8, %9, %cst {dimension_numbers = #tpu.dot_dimension_numbers<[1], [1], [0], [0], [0, 0, 1, 0], [], []>} : vector<8x8xbf16>, vector<8x8xbf16>, vector<8x8xf32> -> vector<8x8xf32>
    %cst_2 = arith.constant 0.353553385 : f32
    %11 = vector.broadcast %cst_2 : f32 to vector<8x8xf32>
    %12 = arith.mulf %10, %11 : vector<8x8xf32>
    %cst_3 = arith.constant dense<0xFF800000> : vector<8xf32>
    %13 = vector.multi_reduction <maximumf>, %12, %cst_3 [1] : vector<8x8xf32> to vector<8xf32>
    %14 = vector.shape_cast %13 : vector<8xf32> to vector<8x1xf32>
    %15 = vector.broadcast %14 : vector<8x1xf32> to vector<8x8xf32>
    %16 = arith.subf %12, %15 : vector<8x8xf32>
    %17 = math.exp %16 : vector<8x8xf32>
    %cst_4 = arith.constant dense<0.000000e+00> : vector<8xf32>
    %18 = vector.multi_reduction <add>, %17, %cst_4 [1] : vector<8x8xf32> to vector<8xf32>
    %19 = vector.shape_cast %18 : vector<8xf32> to vector<8x1xf32>
    %20 = tpu.reciprocal %19 {approx = true} : vector<8x1xf32> -> vector<8x1xf32>
    %21 = vector.broadcast %20 : vector<8x1xf32> to vector<8x8xf32>
    %22 = arith.mulf %17, %21 : vector<8x8xf32>
    %c0_5 = arith.constant 0 : index
    %c0_6 = arith.constant 0 : index
    %c0_7 = arith.constant 0 : index
    %c0_8 = arith.constant 0 : index
    %23 = vector.load %arg3[%c0_5, %c0_6, %c0_7, %c0_8] : memref<1x4x8x8xf32, #tpu.memory_space<vmem>>, vector<1x1x8x8xf32>
    %24 = vector.shape_cast %23 : vector<1x1x8x8xf32> to vector<8x8xf32>
    %25 = vector.shape_cast %22 : vector<8x8xf32> to vector<1x1x8x8xf32>
    tpu.vector_store %arg3[%c0_5, %c0_6, %c0_7, %c0_8], %25 {strides = array<i32>} : memref<1x4x8x8xf32, #tpu.memory_space<vmem>>, vector<1x1x8x8xf32>,
    %26 = arith.truncf %22 : vector<8x8xf32> to vector<8x8xbf16>
    %27 = arith.truncf %7 : vector<8x8xf32> to vector<8x8xbf16>
    %cst_9 = arith.constant dense<0.000000e+00> : vector<8x8xf32>
    %28 = tpu.matmul %26, %27, %cst_9 {dimension_numbers = #tpu.dot_dimension_numbers<[1], [0], [0], [1], [0, 0, 1, 1], [], []>} : vector<8x8xbf16>, vector<8x8xbf16>, vector<8x8xf32> -> vector<8x8xf32>
    %29 = vector.extract_strided_slice %2 {offsets = [0, 8], sizes = [8, 8], strides = [1, 1]} : vector<8x32xf32> to vector<8x8xf32>
    %30 = vector.extract_strided_slice %3 {offsets = [0, 8], sizes = [8, 8], strides = [1, 1]} : vector<8x32xf32> to vector<8x8xf32>
    %31 = vector.extract_strided_slice %4 {offsets = [0, 8], sizes = [8, 8], strides = [1, 1]} : vector<8x32xf32> to vector<8x8xf32>
    %32 = arith.truncf %29 : vector<8x8xf32> to vector<8x8xbf16>
    %33 = arith.truncf %30 : vector<8x8xf32> to vector<8x8xbf16>
    %cst_10 = arith.constant dense<0.000000e+00> : vector<8x8xf32>
    %34 = tpu.matmul %32, %33, %cst_10 {dimension_numbers = #tpu.dot_dimension_numbers<[1], [1], [0], [0], [0, 0, 1, 0], [], []>} : vector<8x8xbf16>, vector<8x8xbf16>, vector<8x8xf32> -> vector<8x8xf32>
    %cst_11 = arith.constant 0.353553385 : f32
    %35 = vector.broadcast %cst_11 : f32 to vector<8x8xf32>
    %36 = arith.mulf %34, %35 : vector<8x8xf32>
    %cst_12 = arith.constant dense<0xFF800000> : vector<8xf32>
    %37 = vector.multi_reduction <maximumf>, %36, %cst_12 [1] : vector<8x8xf32> to vector<8xf32>
    %38 = vector.shape_cast %37 : vector<8xf32> to vector<8x1xf32>
    %39 = vector.broadcast %38 : vector<8x1xf32> to vector<8x8xf32>
    %40 = arith.subf %36, %39 : vector<8x8xf32>
    %41 = math.exp %40 : vector<8x8xf32>
    %cst_13 = arith.constant dense<0.000000e+00> : vector<8xf32>
    %42 = vector.multi_reduction <add>, %41, %cst_13 [1] : vector<8x8xf32> to vector<8xf32>
    %43 = vector.shape_cast %42 : vector<8xf32> to vector<8x1xf32>
    %44 = tpu.reciprocal %43 {approx = true} : vector<8x1xf32> -> vector<8x1xf32>
    %45 = vector.broadcast %44 : vector<8x1xf32> to vector<8x8xf32>
    %46 = arith.mulf %41, %45 : vector<8x8xf32>
    %c0_14 = arith.constant 0 : index
    %c1 = arith.constant 1 : index
    %c0_15 = arith.constant 0 : index
    %c0_16 = arith.constant 0 : index
    %47 = vector.load %arg3[%c0_14, %c1, %c0_15, %c0_16] : memref<1x4x8x8xf32, #tpu.memory_space<vmem>>, vector<1x1x8x8xf32>
    %48 = vector.shape_cast %47 : vector<1x1x8x8xf32> to vector<8x8xf32>
    %49 = vector.shape_cast %46 : vector<8x8xf32> to vector<1x1x8x8xf32>
    tpu.vector_store %arg3[%c0_14, %c1, %c0_15, %c0_16], %49 {strides = array<i32>} : memref<1x4x8x8xf32, #tpu.memory_space<vmem>>, vector<1x1x8x8xf32>,
    %50 = arith.truncf %46 : vector<8x8xf32> to vector<8x8xbf16>
    %51 = arith.truncf %31 : vector<8x8xf32> to vector<8x8xbf16>
    %cst_17 = arith.constant dense<0.000000e+00> : vector<8x8xf32>
    %52 = tpu.matmul %50, %51, %cst_17 {dimension_numbers = #tpu.dot_dimension_numbers<[1], [0], [0], [1], [0, 0, 1, 1], [], []>} : vector<8x8xbf16>, vector<8x8xbf16>, vector<8x8xf32> -> vector<8x8xf32>
    %53 = vector.extract_strided_slice %2 {offsets = [0, 16], sizes = [8, 8], strides = [1, 1]} : vector<8x32xf32> to vector<8x8xf32>
    %54 = vector.extract_strided_slice %3 {offsets = [0, 16], sizes = [8, 8], strides = [1, 1]} : vector<8x32xf32> to vector<8x8xf32>
    %55 = vector.extract_strided_slice %4 {offsets = [0, 16], sizes = [8, 8], strides = [1, 1]} : vector<8x32xf32> to vector<8x8xf32>
    %56 = arith.truncf %53 : vector<8x8xf32> to vector<8x8xbf16>
    %57 = arith.truncf %54 : vector<8x8xf32> to vector<8x8xbf16>
    %cst_18 = arith.constant dense<0.000000e+00> : vector<8x8xf32>
    %58 = tpu.matmul %56, %57, %cst_18 {dimension_numbers = #tpu.dot_dimension_numbers<[1], [1], [0], [0], [0, 0, 1, 0], [], []>} : vector<8x8xbf16>, vector<8x8xbf16>, vector<8x8xf32> -> vector<8x8xf32>
    %cst_19 = arith.constant 0.353553385 : f32
    %59 = vector.broadcast %cst_19 : f32 to vector<8x8xf32>
    %60 = arith.mulf %58, %59 : vector<8x8xf32>
    %cst_20 = arith.constant dense<0xFF800000> : vector<8xf32>
    %61 = vector.multi_reduction <maximumf>, %60, %cst_20 [1] : vector<8x8xf32> to vector<8xf32>
    %62 = vector.shape_cast %61 : vector<8xf32> to vector<8x1xf32>
    %63 = vector.broadcast %62 : vector<8x1xf32> to vector<8x8xf32>
    %64 = arith.subf %60, %63 : vector<8x8xf32>
    %65 = math.exp %64 : vector<8x8xf32>
    %cst_21 = arith.constant dense<0.000000e+00> : vector<8xf32>
    %66 = vector.multi_reduction <add>, %65, %cst_21 [1] : vector<8x8xf32> to vector<8xf32>
    %67 = vector.shape_cast %66 : vector<8xf32> to vector<8x1xf32>
    %68 = tpu.reciprocal %67 {approx = true} : vector<8x1xf32> -> vector<8x1xf32>
    %69 = vector.broadcast %68 : vector<8x1xf32> to vector<8x8xf32>
    %70 = arith.mulf %65, %69 : vector<8x8xf32>
    %c0_22 = arith.constant 0 : index
    %c2 = arith.constant 2 : index
    %c0_23 = arith.constant 0 : index
    %c0_24 = arith.constant 0 : index
    %71 = vector.load %arg3[%c0_22, %c2, %c0_23, %c0_24] : memref<1x4x8x8xf32, #tpu.memory_space<vmem>>, vector<1x1x8x8xf32>
    %72 = vector.shape_cast %71 : vector<1x1x8x8xf32> to vector<8x8xf32>
    %73 = vector.shape_cast %70 : vector<8x8xf32> to vector<1x1x8x8xf32>
    tpu.vector_store %arg3[%c0_22, %c2, %c0_23, %c0_24], %73 {strides = array<i32>} : memref<1x4x8x8xf32, #tpu.memory_space<vmem>>, vector<1x1x8x8xf32>,
    %74 = arith.truncf %70 : vector<8x8xf32> to vector<8x8xbf16>
    %75 = arith.truncf %55 : vector<8x8xf32> to vector<8x8xbf16>
    %cst_25 = arith.constant dense<0.000000e+00> : vector<8x8xf32>
    %76 = tpu.matmul %74, %75, %cst_25 {dimension_numbers = #tpu.dot_dimension_numbers<[1], [0], [0], [1], [0, 0, 1, 1], [], []>} : vector<8x8xbf16>, vector<8x8xbf16>, vector<8x8xf32> -> vector<8x8xf32>
    %77 = vector.extract_strided_slice %2 {offsets = [0, 24], sizes = [8, 8], strides = [1, 1]} : vector<8x32xf32> to vector<8x8xf32>
    %78 = vector.extract_strided_slice %3 {offsets = [0, 24], sizes = [8, 8], strides = [1, 1]} : vector<8x32xf32> to vector<8x8xf32>
    %79 = vector.extract_strided_slice %4 {offsets = [0, 24], sizes = [8, 8], strides = [1, 1]} : vector<8x32xf32> to vector<8x8xf32>
    %80 = arith.truncf %77 : vector<8x8xf32> to vector<8x8xbf16>
    %81 = arith.truncf %78 : vector<8x8xf32> to vector<8x8xbf16>
    %cst_26 = arith.constant dense<0.000000e+00> : vector<8x8xf32>
    %82 = tpu.matmul %80, %81, %cst_26 {dimension_numbers = #tpu.dot_dimension_numbers<[1], [1], [0], [0], [0, 0, 1, 0], [], []>} : vector<8x8xbf16>, vector<8x8xbf16>, vector<8x8xf32> -> vector<8x8xf32>
    %cst_27 = arith.constant 0.353553385 : f32
    %83 = vector.broadcast %cst_27 : f32 to vector<8x8xf32>
    %84 = arith.mulf %82, %83 : vector<8x8xf32>
    %cst_28 = arith.constant dense<0xFF800000> : vector<8xf32>
    %85 = vector.multi_reduction <maximumf>, %84, %cst_28 [1] : vector<8x8xf32> to vector<8xf32>
    %86 = vector.shape_cast %85 : vector<8xf32> to vector<8x1xf32>
    %87 = vector.broadcast %86 : vector<8x1xf32> to vector<8x8xf32>
    %88 = arith.subf %84, %87 : vector<8x8xf32>
    %89 = math.exp %88 : vector<8x8xf32>
    %cst_29 = arith.constant dense<0.000000e+00> : vector<8xf32>
    %90 = vector.multi_reduction <add>, %89, %cst_29 [1] : vector<8x8xf32> to vector<8xf32>
    %91 = vector.shape_cast %90 : vector<8xf32> to vector<8x1xf32>
    %92 = tpu.reciprocal %91 {approx = true} : vector<8x1xf32> -> vector<8x1xf32>
    %93 = vector.broadcast %92 : vector<8x1xf32> to vector<8x8xf32>
    %94 = arith.mulf %89, %93 : vector<8x8xf32>
    %c0_30 = arith.constant 0 : index
    %c3 = arith.constant 3 : index
    %c0_31 = arith.constant 0 : index
    %c0_32 = arith.constant 0 : index
    %95 = vector.load %arg3[%c0_30, %c3, %c0_31, %c0_32] : memref<1x4x8x8xf32, #tpu.memory_space<vmem>>, vector<1x1x8x8xf32>
    %96 = vector.shape_cast %95 : vector<1x1x8x8xf32> to vector<8x8xf32>
    %97 = vector.shape_cast %94 : vector<8x8xf32> to vector<1x1x8x8xf32>
    tpu.vector_store %arg3[%c0_30, %c3, %c0_31, %c0_32], %97 {strides = array<i32>} : memref<1x4x8x8xf32, #tpu.memory_space<vmem>>, vector<1x1x8x8xf32>,
    %98 = arith.truncf %94 : vector<8x8xf32> to vector<8x8xbf16>
    %99 = arith.truncf %79 : vector<8x8xf32> to vector<8x8xbf16>
    %cst_33 = arith.constant dense<0.000000e+00> : vector<8x8xf32>
    %100 = tpu.matmul %98, %99, %cst_33 {dimension_numbers = #tpu.dot_dimension_numbers<[1], [0], [0], [1], [0, 0, 1, 1], [], []>} : vector<8x8xbf16>, vector<8x8xbf16>, vector<8x8xf32> -> vector<8x8xf32>
    %101 = tpu.concatenate %28, %52, %76, %100 in 1 : vector<8x8xf32>, vector<8x8xf32>, vector<8x8xf32>, vector<8x8xf32> -> vector<8x32xf32>
    %c0_34 = arith.constant 0 : index
    %c0_35 = arith.constant 0 : index
    %c0_36 = arith.constant 0 : index
    %102 = vector.load %arg2[%c0_34, %c0_35, %c0_36] : memref<1x8x32xf32, #tpu.memory_space<vmem>>, vector<1x8x32xf32>
    %103 = vector.shape_cast %102 : vector<1x8x32xf32> to vector<8x32xf32>
    %104 = vector.shape_cast %101 : vector<8x32xf32> to vector<1x8x32xf32>
    tpu.vector_store %arg2[%c0_34, %c0_35, %c0_36], %104 {strides = array<i32>} : memref<1x8x32xf32, #tpu.memory_space<vmem>>, vector<1x8x32xf32>,
    return
  }
  func.func @transform_0(%arg0: i32) -> (i32, i32, i32) {
    %c0_i32 = arith.constant 0 : i32
    %c0_i32_0 = arith.constant 0 : i32
    %c0_i32_1 = arith.constant 0 : i32
    return %arg0, %c0_i32, %c0_i32_0 : i32, i32, i32
  }
  func.func @transform_1(%arg0: i32) -> (i32, i32, i32) {
    %c0_i32 = arith.constant 0 : i32
    %c0_i32_0 = arith.constant 0 : i32
    %c0_i32_1 = arith.constant 0 : i32
    return %arg0, %c0_i32, %c0_i32_0 : i32, i32, i32
  }
  func.func @transform_2(%arg0: i32) -> (i32, i32, i32, i32) {
    %c0_i32 = arith.constant 0 : i32
    %c0_i32_0 = arith.constant 0 : i32
    %c0_i32_1 = arith.constant 0 : i32
    %c0_i32_2 = arith.constant 0 : i32
    return %arg0, %c0_i32, %c0_i32_0, %c0_i32_1 : i32, i32, i32, i32
  }
}

module attributes {stable_mosaic.version = 11 : i64} {
  func.func @_linear_kernel(%arg0: i32, %arg1: i32, %arg2: i32, %arg3: memref<16x32xf32, #tpu.memory_space<vmem>>, %arg4: memref<32x96xf32, #tpu.memory_space<vmem>>, %arg5: memref<1x96xf32, #tpu.memory_space<vmem>>, %arg6: memref<16x96xf32, #tpu.memory_space<vmem>>, %arg7: memref<16x96xf32, #tpu.memory_space<vmem>>) attributes {dimension_semantics = [#tpu.dimension_semantics<parallel>, #tpu.dimension_semantics<parallel>, #tpu.dimension_semantics<arbitrary>], iteration_bounds = array<i64: 1, 1, 1>, scalar_prefetch = 0 : i64, scratch_operands = 1 : i64, tpu.core_type = #tpu.core_type<tc>, window_params = [{transform_indices = @transform_0, window_bounds = array<i64: 16, 32>}, {transform_indices = @transform_1, window_bounds = array<i64: 32, 96>}, {transform_indices = @transform_2, window_bounds = array<i64: 1, 96>}, {transform_indices = @transform_3, window_bounds = array<i64: 16, 96>}]} {
    %c0_i32 = arith.constant 0 : i32
    %0 = arith.cmpi eq, %arg2, %c0_i32 : i32
    %1 = arith.extui %0 : i1 to i32
    %c0_i32_0 = arith.constant 0 : i32
    %2 = arith.cmpi ne, %1, %c0_i32_0 : i32
    scf.if %2 {
      %cst_10 = arith.constant 0.000000e+00 : f32
      %14 = vector.broadcast %cst_10 : f32 to vector<16x96xf32>
      %c0_11 = arith.constant 0 : index
      %c0_12 = arith.constant 0 : index
      %15 = vector.load %arg7[%c0_11, %c0_12] : memref<16x96xf32, #tpu.memory_space<vmem>>, vector<16x96xf32>
      tpu.vector_store %arg7[%c0_11, %c0_12], %14 {strides = array<i32>} : memref<16x96xf32, #tpu.memory_space<vmem>>, vector<16x96xf32>,
    } else {
    }
    %c0 = arith.constant 0 : index
    %c0_1 = arith.constant 0 : index
    %3 = vector.load %arg7[%c0, %c0_1] : memref<16x96xf32, #tpu.memory_space<vmem>>, vector<16x96xf32>
    %c0_2 = arith.constant 0 : index
    %c0_3 = arith.constant 0 : index
    %4 = vector.load %arg3[%c0_2, %c0_3] : memref<16x32xf32, #tpu.memory_space<vmem>>, vector<16x32xf32>
    %5 = arith.truncf %4 : vector<16x32xf32> to vector<16x32xbf16>
    %c0_4 = arith.constant 0 : index
    %c0_5 = arith.constant 0 : index
    %6 = vector.load %arg4[%c0_4, %c0_5] : memref<32x96xf32, #tpu.memory_space<vmem>>, vector<32x96xf32>
    %7 = arith.truncf %6 : vector<32x96xf32> to vector<32x96xbf16>
    %cst = arith.constant dense<0.000000e+00> : vector<16x96xf32>
    %8 = tpu.matmul %5, %7, %cst {dimension_numbers = #tpu.dot_dimension_numbers<[1], [0], [0], [1], [0, 0, 1, 1], [], []>} : vector<16x32xbf16>, vector<32x96xbf16>, vector<16x96xf32> -> vector<16x96xf32>
    %9 = arith.addf %3, %8 : vector<16x96xf32>
    %c0_6 = arith.constant 0 : index
    %c0_7 = arith.constant 0 : index
    %10 = vector.load %arg7[%c0_6, %c0_7] : memref<16x96xf32, #tpu.memory_space<vmem>>, vector<16x96xf32>
    tpu.vector_store %arg7[%c0_6, %c0_7], %9 {strides = array<i32>} : memref<16x96xf32, #tpu.memory_space<vmem>>, vector<16x96xf32>,
    %c0_i32_8 = arith.constant 0 : i32
    %11 = arith.cmpi eq, %arg2, %c0_i32_8 : i32
    %12 = arith.extui %11 : i1 to i32
    %c0_i32_9 = arith.constant 0 : i32
    %13 = arith.cmpi ne, %12, %c0_i32_9 : i32
    scf.if %13 {
      %c0_10 = arith.constant 0 : index
      %c0_11 = arith.constant 0 : index
      %14 = vector.load %arg7[%c0_10, %c0_11] : memref<16x96xf32, #tpu.memory_space<vmem>>, vector<16x96xf32>
      %c0_12 = arith.constant 0 : index
      %c0_13 = arith.constant 0 : index
      %15 = vector.load %arg5[%c0_12, %c0_13] : memref<1x96xf32, #tpu.memory_space<vmem>>, vector<1x96xf32>
      %16 = vector.broadcast %15 : vector<1x96xf32> to vector<16x96xf32>
      %17 = arith.addf %14, %16 : vector<16x96xf32>
      %c0_14 = arith.constant 0 : index
      %c0_15 = arith.constant 0 : index
      %18 = vector.load %arg6[%c0_14, %c0_15] : memref<16x96xf32, #tpu.memory_space<vmem>>, vector<16x96xf32>
      tpu.vector_store %arg6[%c0_14, %c0_15], %17 {strides = array<i32>} : memref<16x96xf32, #tpu.memory_space<vmem>>, vector<16x96xf32>,
    } else {
    }
    return
  }
  func.func @transform_0(%arg0: i32, %arg1: i32, %arg2: i32) -> (i32, i32) {
    %c0_i32 = arith.constant 0 : i32
    return %arg0, %arg2 : i32, i32
  }
  func.func @transform_1(%arg0: i32, %arg1: i32, %arg2: i32) -> (i32, i32) {
    %c0_i32 = arith.constant 0 : i32
    return %arg2, %arg1 : i32, i32
  }
  func.func @transform_2(%arg0: i32, %arg1: i32, %arg2: i32) -> (i32, i32) {
    %c0_i32 = arith.constant 0 : i32
    %c0_i32_0 = arith.constant 0 : i32
    return %c0_i32, %arg1 : i32, i32
  }
  func.func @transform_3(%arg0: i32, %arg1: i32, %arg2: i32) -> (i32, i32) {
    %c0_i32 = arith.constant 0 : i32
    return %arg0, %arg1 : i32, i32
  }
}

module attributes {stable_mosaic.version = 11 : i64} {
  func.func @_ffn_resid_ln_kernel(%arg0: i32, %arg1: i32, %arg2: memref<16x32xf32, #tpu.memory_space<vmem>>, %arg3: memref<32x64xf32, #tpu.memory_space<vmem>>, %arg4: memref<1x64xf32, #tpu.memory_space<vmem>>, %arg5: memref<64x32xf32, #tpu.memory_space<vmem>>, %arg6: memref<1x32xf32, #tpu.memory_space<vmem>>, %arg7: memref<16x32xf32, #tpu.memory_space<vmem>>, %arg8: memref<1x32xf32, #tpu.memory_space<vmem>>, %arg9: memref<1x32xf32, #tpu.memory_space<vmem>>, %arg10: memref<16x32xf32, #tpu.memory_space<vmem>>, %arg11: memref<16x32xf32, #tpu.memory_space<vmem>>) attributes {dimension_semantics = [#tpu.dimension_semantics<parallel>, #tpu.dimension_semantics<arbitrary>], iteration_bounds = array<i64: 1, 1>, scalar_prefetch = 0 : i64, scratch_operands = 1 : i64, tpu.core_type = #tpu.core_type<tc>, window_params = [{transform_indices = @transform_0, window_bounds = array<i64: 16, 32>}, {transform_indices = @transform_1, window_bounds = array<i64: 32, 64>}, {transform_indices = @transform_2, window_bounds = array<i64: 1, 64>}, {transform_indices = @transform_3, window_bounds = array<i64: 64, 32>}, {pipeline_mode = #tpu.pipeline_mode<synchronous>, transform_indices = @transform_4, window_bounds = array<i64: 1, 32>}, {transform_indices = @transform_5, window_bounds = array<i64: 16, 32>}, {pipeline_mode = #tpu.pipeline_mode<synchronous>, transform_indices = @transform_6, window_bounds = array<i64: 1, 32>}, {pipeline_mode = #tpu.pipeline_mode<synchronous>, transform_indices = @transform_7, window_bounds = array<i64: 1, 32>}, {transform_indices = @transform_8, window_bounds = array<i64: 16, 32>}]} {
    %c0_i32 = arith.constant 0 : i32
    %0 = arith.cmpi eq, %arg1, %c0_i32 : i32
    %1 = arith.extui %0 : i1 to i32
    %c0_i32_0 = arith.constant 0 : i32
    %2 = arith.cmpi ne, %1, %c0_i32_0 : i32
    scf.if %2 {
      %cst_16 = arith.constant 0.000000e+00 : f32
      %23 = vector.broadcast %cst_16 : f32 to vector<16x32xf32>
      %c0_17 = arith.constant 0 : index
      %c0_18 = arith.constant 0 : index
      %24 = vector.load %arg11[%c0_17, %c0_18] : memref<16x32xf32, #tpu.memory_space<vmem>>, vector<16x32xf32>
      tpu.vector_store %arg11[%c0_17, %c0_18], %23 {strides = array<i32>} : memref<16x32xf32, #tpu.memory_space<vmem>>, vector<16x32xf32>,
    } else {
    }
    %c0 = arith.constant 0 : index
    %c0_1 = arith.constant 0 : index
    %3 = vector.load %arg2[%c0, %c0_1] : memref<16x32xf32, #tpu.memory_space<vmem>>, vector<16x32xf32>
    %4 = arith.truncf %3 : vector<16x32xf32> to vector<16x32xbf16>
    %c0_2 = arith.constant 0 : index
    %c0_3 = arith.constant 0 : index
    %5 = vector.load %arg3[%c0_2, %c0_3] : memref<32x64xf32, #tpu.memory_space<vmem>>, vector<32x64xf32>
    %6 = arith.truncf %5 : vector<32x64xf32> to vector<32x64xbf16>
    %cst = arith.constant dense<0.000000e+00> : vector<16x64xf32>
    %7 = tpu.matmul %4, %6, %cst {dimension_numbers = #tpu.dot_dimension_numbers<[1], [0], [0], [1], [0, 0, 1, 1], [], []>} : vector<16x32xbf16>, vector<32x64xbf16>, vector<16x64xf32> -> vector<16x64xf32>
    %c0_4 = arith.constant 0 : index
    %c0_5 = arith.constant 0 : index
    %8 = vector.load %arg4[%c0_4, %c0_5] : memref<1x64xf32, #tpu.memory_space<vmem>>, vector<1x64xf32>
    %9 = vector.broadcast %8 : vector<1x64xf32> to vector<16x64xf32>
    %10 = arith.addf %7, %9 : vector<16x64xf32>
    %cst_6 = arith.constant 0.000000e+00 : f32
    %11 = vector.broadcast %cst_6 : f32 to vector<16x64xf32>
    %12 = arith.maximumf %10, %11 : vector<16x64xf32>
    %c0_7 = arith.constant 0 : index
    %c0_8 = arith.constant 0 : index
    %13 = vector.load %arg11[%c0_7, %c0_8] : memref<16x32xf32, #tpu.memory_space<vmem>>, vector<16x32xf32>
    %14 = arith.truncf %12 : vector<16x64xf32> to vector<16x64xbf16>
    %c0_9 = arith.constant 0 : index
    %c0_10 = arith.constant 0 : index
    %15 = vector.load %arg5[%c0_9, %c0_10] : memref<64x32xf32, #tpu.memory_space<vmem>>, vector<64x32xf32>
    %16 = arith.truncf %15 : vector<64x32xf32> to vector<64x32xbf16>
    %cst_11 = arith.constant dense<0.000000e+00> : vector<16x32xf32>
    %17 = tpu.matmul %14, %16, %cst_11 {dimension_numbers = #tpu.dot_dimension_numbers<[1], [0], [0], [1], [0, 0, 1, 1], [], []>} : vector<16x64xbf16>, vector<64x32xbf16>, vector<16x32xf32> -> vector<16x32xf32>
    %18 = arith.addf %13, %17 : vector<16x32xf32>
    %c0_12 = arith.constant 0 : index
    %c0_13 = arith.constant 0 : index
    %19 = vector.load %arg11[%c0_12, %c0_13] : memref<16x32xf32, #tpu.memory_space<vmem>>, vector<16x32xf32>
    tpu.vector_store %arg11[%c0_12, %c0_13], %18 {strides = array<i32>} : memref<16x32xf32, #tpu.memory_space<vmem>>, vector<16x32xf32>,
    %c0_i32_14 = arith.constant 0 : i32
    %20 = arith.cmpi eq, %arg1, %c0_i32_14 : i32
    %21 = arith.extui %20 : i1 to i32
    %c0_i32_15 = arith.constant 0 : i32
    %22 = arith.cmpi ne, %21, %c0_i32_15 : i32
    scf.if %22 {
      %c0_16 = arith.constant 0 : index
      %c0_17 = arith.constant 0 : index
      %23 = vector.load %arg11[%c0_16, %c0_17] : memref<16x32xf32, #tpu.memory_space<vmem>>, vector<16x32xf32>
      %c0_18 = arith.constant 0 : index
      %c0_19 = arith.constant 0 : index
      %24 = vector.load %arg6[%c0_18, %c0_19] : memref<1x32xf32, #tpu.memory_space<vmem>>, vector<1x32xf32>
      %25 = vector.broadcast %24 : vector<1x32xf32> to vector<16x32xf32>
      %26 = arith.addf %23, %25 : vector<16x32xf32>
      %c0_20 = arith.constant 0 : index
      %c0_21 = arith.constant 0 : index
      %27 = vector.load %arg7[%c0_20, %c0_21] : memref<16x32xf32, #tpu.memory_space<vmem>>, vector<16x32xf32>
      %28 = arith.addf %26, %27 : vector<16x32xf32>
      %cst_22 = arith.constant dense<0.000000e+00> : vector<16xf32>
      %29 = vector.multi_reduction <add>, %28, %cst_22 [1] : vector<16x32xf32> to vector<16xf32>
      %30 = vector.shape_cast %29 : vector<16xf32> to vector<16x1xf32>
      %cst_23 = arith.constant 3.200000e+01 : f32
      %31 = vector.broadcast %cst_23 : f32 to vector<16x1xf32>
      %32 = arith.divf %30, %31 : vector<16x1xf32>
      %33 = vector.broadcast %32 : vector<16x1xf32> to vector<16x32xf32>
      %34 = arith.subf %28, %33 : vector<16x32xf32>
      %35 = vector.broadcast %32 : vector<16x1xf32> to vector<16x32xf32>
      %36 = arith.subf %28, %35 : vector<16x32xf32>
      %37 = arith.mulf %34, %36 : vector<16x32xf32>
      %cst_24 = arith.constant dense<0.000000e+00> : vector<16xf32>
      %38 = vector.multi_reduction <add>, %37, %cst_24 [1] : vector<16x32xf32> to vector<16xf32>
      %39 = vector.shape_cast %38 : vector<16xf32> to vector<16x1xf32>
      %cst_25 = arith.constant 3.200000e+01 : f32
      %40 = vector.broadcast %cst_25 : f32 to vector<16x1xf32>
      %41 = arith.divf %39, %40 : vector<16x1xf32>
      %cst_26 = arith.constant 9.99999974E-6 : f32
      %42 = vector.broadcast %cst_26 : f32 to vector<16x1xf32>
      %43 = arith.addf %41, %42 : vector<16x1xf32>
      %44 = math.rsqrt %43 : vector<16x1xf32>
      %45 = vector.broadcast %32 : vector<16x1xf32> to vector<16x32xf32>
      %46 = arith.subf %28, %45 : vector<16x32xf32>
      %47 = vector.broadcast %44 : vector<16x1xf32> to vector<16x32xf32>
      %48 = arith.mulf %46, %47 : vector<16x32xf32>
      %c0_27 = arith.constant 0 : index
      %c0_28 = arith.constant 0 : index
      %49 = vector.load %arg8[%c0_27, %c0_28] : memref<1x32xf32, #tpu.memory_space<vmem>>, vector<1x32xf32>
      %50 = vector.broadcast %49 : vector<1x32xf32> to vector<16x32xf32>
      %51 = arith.mulf %48, %50 : vector<16x32xf32>
      %c0_29 = arith.constant 0 : index
      %c0_30 = arith.constant 0 : index
      %52 = vector.load %arg9[%c0_29, %c0_30] : memref<1x32xf32, #tpu.memory_space<vmem>>, vector<1x32xf32>
      %53 = vector.broadcast %52 : vector<1x32xf32> to vector<16x32xf32>
      %54 = arith.addf %51, %53 : vector<16x32xf32>
      %c0_31 = arith.constant 0 : index
      %c0_32 = arith.constant 0 : index
      %55 = vector.load %arg10[%c0_31, %c0_32] : memref<16x32xf32, #tpu.memory_space<vmem>>, vector<16x32xf32>
      tpu.vector_store %arg10[%c0_31, %c0_32], %54 {strides = array<i32>} : memref<16x32xf32, #tpu.memory_space<vmem>>, vector<16x32xf32>,
    } else {
    }
    return
  }
  func.func @transform_0(%arg0: i32, %arg1: i32) -> (i32, i32) {
    %c0_i32 = arith.constant 0 : i32
    %c0_i32_0 = arith.constant 0 : i32
    return %arg0, %c0_i32 : i32, i32
  }
  func.func @transform_1(%arg0: i32, %arg1: i32) -> (i32, i32) {
    %c0_i32 = arith.constant 0 : i32
    %c0_i32_0 = arith.constant 0 : i32
    return %c0_i32, %arg1 : i32, i32
  }
  func.func @transform_2(%arg0: i32, %arg1: i32) -> (i32, i32) {
    %c0_i32 = arith.constant 0 : i32
    %c0_i32_0 = arith.constant 0 : i32
    return %c0_i32, %arg1 : i32, i32
  }
  func.func @transform_3(%arg0: i32, %arg1: i32) -> (i32, i32) {
    %c0_i32 = arith.constant 0 : i32
    %c0_i32_0 = arith.constant 0 : i32
    return %arg1, %c0_i32 : i32, i32
  }
  func.func @transform_4(%arg0: i32, %arg1: i32) -> (i32, i32) {
    %c0_i32 = arith.constant 0 : i32
    %c0_i32_0 = arith.constant 0 : i32
    %c0_i32_1 = arith.constant 0 : i32
    return %c0_i32, %c0_i32_0 : i32, i32
  }
  func.func @transform_5(%arg0: i32, %arg1: i32) -> (i32, i32) {
    %c0_i32 = arith.constant 0 : i32
    %c0_i32_0 = arith.constant 0 : i32
    return %arg0, %c0_i32 : i32, i32
  }
  func.func @transform_6(%arg0: i32, %arg1: i32) -> (i32, i32) {
    %c0_i32 = arith.constant 0 : i32
    %c0_i32_0 = arith.constant 0 : i32
    %c0_i32_1 = arith.constant 0 : i32
    return %c0_i32, %c0_i32_0 : i32, i32
  }
  func.func @transform_7(%arg0: i32, %arg1: i32) -> (i32, i32) {
    %c0_i32 = arith.constant 0 : i32
    %c0_i32_0 = arith.constant 0 : i32
    %c0_i32_1 = arith.constant 0 : i32
    return %c0_i32, %c0_i32_0 : i32, i32
  }
  func.func @transform_8(%arg0: i32, %arg1: i32) -> (i32, i32) {
    %c0_i32 = arith.constant 0 : i32
    %c0_i32_0 = arith.constant 0 : i32
    return %arg0, %c0_i32 : i32, i32
  }
}

module attributes {stable_mosaic.version = 11 : i64} {
  func.func @_linear_kernel(%arg0: i32, %arg1: i32, %arg2: i32, %arg3: memref<16x32xf32, #tpu.memory_space<vmem>>, %arg4: memref<32x64xf32, #tpu.memory_space<vmem>>, %arg5: memref<1x64xf32, #tpu.memory_space<vmem>>, %arg6: memref<16x64xf32, #tpu.memory_space<vmem>>, %arg7: memref<16x64xf32, #tpu.memory_space<vmem>>) attributes {dimension_semantics = [#tpu.dimension_semantics<parallel>, #tpu.dimension_semantics<parallel>, #tpu.dimension_semantics<arbitrary>], iteration_bounds = array<i64: 1, 1, 1>, scalar_prefetch = 0 : i64, scratch_operands = 1 : i64, tpu.core_type = #tpu.core_type<tc>, window_params = [{transform_indices = @transform_0, window_bounds = array<i64: 16, 32>}, {transform_indices = @transform_1, window_bounds = array<i64: 32, 64>}, {transform_indices = @transform_2, window_bounds = array<i64: 1, 64>}, {transform_indices = @transform_3, window_bounds = array<i64: 16, 64>}]} {
    %c0_i32 = arith.constant 0 : i32
    %0 = arith.cmpi eq, %arg2, %c0_i32 : i32
    %1 = arith.extui %0 : i1 to i32
    %c0_i32_0 = arith.constant 0 : i32
    %2 = arith.cmpi ne, %1, %c0_i32_0 : i32
    scf.if %2 {
      %cst_10 = arith.constant 0.000000e+00 : f32
      %14 = vector.broadcast %cst_10 : f32 to vector<16x64xf32>
      %c0_11 = arith.constant 0 : index
      %c0_12 = arith.constant 0 : index
      %15 = vector.load %arg7[%c0_11, %c0_12] : memref<16x64xf32, #tpu.memory_space<vmem>>, vector<16x64xf32>
      tpu.vector_store %arg7[%c0_11, %c0_12], %14 {strides = array<i32>} : memref<16x64xf32, #tpu.memory_space<vmem>>, vector<16x64xf32>,
    } else {
    }
    %c0 = arith.constant 0 : index
    %c0_1 = arith.constant 0 : index
    %3 = vector.load %arg7[%c0, %c0_1] : memref<16x64xf32, #tpu.memory_space<vmem>>, vector<16x64xf32>
    %c0_2 = arith.constant 0 : index
    %c0_3 = arith.constant 0 : index
    %4 = vector.load %arg3[%c0_2, %c0_3] : memref<16x32xf32, #tpu.memory_space<vmem>>, vector<16x32xf32>
    %5 = arith.truncf %4 : vector<16x32xf32> to vector<16x32xbf16>
    %c0_4 = arith.constant 0 : index
    %c0_5 = arith.constant 0 : index
    %6 = vector.load %arg4[%c0_4, %c0_5] : memref<32x64xf32, #tpu.memory_space<vmem>>, vector<32x64xf32>
    %7 = arith.truncf %6 : vector<32x64xf32> to vector<32x64xbf16>
    %cst = arith.constant dense<0.000000e+00> : vector<16x64xf32>
    %8 = tpu.matmul %5, %7, %cst {dimension_numbers = #tpu.dot_dimension_numbers<[1], [0], [0], [1], [0, 0, 1, 1], [], []>} : vector<16x32xbf16>, vector<32x64xbf16>, vector<16x64xf32> -> vector<16x64xf32>
    %9 = arith.addf %3, %8 : vector<16x64xf32>
    %c0_6 = arith.constant 0 : index
    %c0_7 = arith.constant 0 : index
    %10 = vector.load %arg7[%c0_6, %c0_7] : memref<16x64xf32, #tpu.memory_space<vmem>>, vector<16x64xf32>
    tpu.vector_store %arg7[%c0_6, %c0_7], %9 {strides = array<i32>} : memref<16x64xf32, #tpu.memory_space<vmem>>, vector<16x64xf32>,
    %c0_i32_8 = arith.constant 0 : i32
    %11 = arith.cmpi eq, %arg2, %c0_i32_8 : i32
    %12 = arith.extui %11 : i1 to i32
    %c0_i32_9 = arith.constant 0 : i32
    %13 = arith.cmpi ne, %12, %c0_i32_9 : i32
    scf.if %13 {
      %c0_10 = arith.constant 0 : index
      %c0_11 = arith.constant 0 : index
      %14 = vector.load %arg7[%c0_10, %c0_11] : memref<16x64xf32, #tpu.memory_space<vmem>>, vector<16x64xf32>
      %c0_12 = arith.constant 0 : index
      %c0_13 = arith.constant 0 : index
      %15 = vector.load %arg5[%c0_12, %c0_13] : memref<1x64xf32, #tpu.memory_space<vmem>>, vector<1x64xf32>
      %16 = vector.broadcast %15 : vector<1x64xf32> to vector<16x64xf32>
      %17 = arith.addf %14, %16 : vector<16x64xf32>
      %c0_14 = arith.constant 0 : index
      %c0_15 = arith.constant 0 : index
      %18 = vector.load %arg6[%c0_14, %c0_15] : memref<16x64xf32, #tpu.memory_space<vmem>>, vector<16x64xf32>
      tpu.vector_store %arg6[%c0_14, %c0_15], %17 {strides = array<i32>} : memref<16x64xf32, #tpu.memory_space<vmem>>, vector<16x64xf32>,
    } else {
    }
    return
  }
  func.func @transform_0(%arg0: i32, %arg1: i32, %arg2: i32) -> (i32, i32) {
    %c0_i32 = arith.constant 0 : i32
    return %arg0, %arg2 : i32, i32
  }
  func.func @transform_1(%arg0: i32, %arg1: i32, %arg2: i32) -> (i32, i32) {
    %c0_i32 = arith.constant 0 : i32
    return %arg2, %arg1 : i32, i32
  }
  func.func @transform_2(%arg0: i32, %arg1: i32, %arg2: i32) -> (i32, i32) {
    %c0_i32 = arith.constant 0 : i32
    %c0_i32_0 = arith.constant 0 : i32
    return %c0_i32, %arg1 : i32, i32
  }
  func.func @transform_3(%arg0: i32, %arg1: i32, %arg2: i32) -> (i32, i32) {
    %c0_i32 = arith.constant 0 : i32
    return %arg0, %arg1 : i32, i32
  }
}

module attributes {stable_mosaic.version = 11 : i64} {
  func.func @_cross_attn_kernel(%arg0: i32, %arg1: memref<1x8x32xf32, #tpu.memory_space<vmem>>, %arg2: memref<1x8x64xf32, #tpu.memory_space<vmem>>, %arg3: memref<1x8x32xf32, #tpu.memory_space<vmem>>, %arg4: memref<1x4x8x8xf32, #tpu.memory_space<vmem>>) attributes {dimension_semantics = [#tpu.dimension_semantics<parallel>], iteration_bounds = array<i64: 2>, scalar_prefetch = 0 : i64, scratch_operands = 0 : i64, tpu.core_type = #tpu.core_type<tc>, window_params = [{transform_indices = @transform_0, window_bounds = array<i64: 1, 8, 32>}, {transform_indices = @transform_1, window_bounds = array<i64: 1, 8, 64>}, {transform_indices = @transform_2, window_bounds = array<i64: 1, 8, 32>}, {transform_indices = @transform_3, window_bounds = array<i64: 1, 4, 8, 8>}]} {
    %c0 = arith.constant 0 : index
    %c0_0 = arith.constant 0 : index
    %c0_1 = arith.constant 0 : index
    %0 = vector.load %arg2[%c0, %c0_0, %c0_1] : memref<1x8x64xf32, #tpu.memory_space<vmem>>, vector<1x8x64xf32>
    %1 = vector.shape_cast %0 : vector<1x8x64xf32> to vector<8x64xf32>
    %c0_2 = arith.constant 0 : index
    %c0_3 = arith.constant 0 : index
    %c0_4 = arith.constant 0 : index
    %2 = vector.load %arg1[%c0_2, %c0_3, %c0_4] : memref<1x8x32xf32, #tpu.memory_space<vmem>>, vector<1x8x32xf32>
    %3 = vector.shape_cast %2 : vector<1x8x32xf32> to vector<8x32xf32>
    %4 = vector.extract_strided_slice %1 {offsets = [0, 0], sizes = [8, 32], strides = [1, 1]} : vector<8x64xf32> to vector<8x32xf32>
    %5 = vector.extract_strided_slice %1 {offsets = [0, 32], sizes = [8, 32], strides = [1, 1]} : vector<8x64xf32> to vector<8x32xf32>
    %6 = vector.extract_strided_slice %3 {offsets = [0, 0], sizes = [8, 8], strides = [1, 1]} : vector<8x32xf32> to vector<8x8xf32>
    %7 = vector.extract_strided_slice %4 {offsets = [0, 0], sizes = [8, 8], strides = [1, 1]} : vector<8x32xf32> to vector<8x8xf32>
    %8 = vector.extract_strided_slice %5 {offsets = [0, 0], sizes = [8, 8], strides = [1, 1]} : vector<8x32xf32> to vector<8x8xf32>
    %9 = arith.truncf %6 : vector<8x8xf32> to vector<8x8xbf16>
    %10 = arith.truncf %7 : vector<8x8xf32> to vector<8x8xbf16>
    %cst = arith.constant dense<0.000000e+00> : vector<8x8xf32>
    %11 = tpu.matmul %9, %10, %cst {dimension_numbers = #tpu.dot_dimension_numbers<[1], [1], [0], [0], [0, 0, 1, 0], [], []>} : vector<8x8xbf16>, vector<8x8xbf16>, vector<8x8xf32> -> vector<8x8xf32>
    %cst_5 = arith.constant 0.353553385 : f32
    %12 = vector.broadcast %cst_5 : f32 to vector<8x8xf32>
    %13 = arith.mulf %11, %12 : vector<8x8xf32>
    %cst_6 = arith.constant dense<0xFF800000> : vector<8xf32>
    %14 = vector.multi_reduction <maximumf>, %13, %cst_6 [1] : vector<8x8xf32> to vector<8xf32>
    %15 = vector.shape_cast %14 : vector<8xf32> to vector<8x1xf32>
    %16 = vector.broadcast %15 : vector<8x1xf32> to vector<8x8xf32>
    %17 = arith.subf %13, %16 : vector<8x8xf32>
    %18 = math.exp %17 : vector<8x8xf32>
    %cst_7 = arith.constant dense<0.000000e+00> : vector<8xf32>
    %19 = vector.multi_reduction <add>, %18, %cst_7 [1] : vector<8x8xf32> to vector<8xf32>
    %20 = vector.shape_cast %19 : vector<8xf32> to vector<8x1xf32>
    %21 = tpu.reciprocal %20 {approx = true} : vector<8x1xf32> -> vector<8x1xf32>
    %22 = vector.broadcast %21 : vector<8x1xf32> to vector<8x8xf32>
    %23 = arith.mulf %18, %22 : vector<8x8xf32>
    %c0_8 = arith.constant 0 : index
    %c0_9 = arith.constant 0 : index
    %c0_10 = arith.constant 0 : index
    %c0_11 = arith.constant 0 : index
    %24 = vector.load %arg4[%c0_8, %c0_9, %c0_10, %c0_11] : memref<1x4x8x8xf32, #tpu.memory_space<vmem>>, vector<1x1x8x8xf32>
    %25 = vector.shape_cast %24 : vector<1x1x8x8xf32> to vector<8x8xf32>
    %26 = vector.shape_cast %23 : vector<8x8xf32> to vector<1x1x8x8xf32>
    tpu.vector_store %arg4[%c0_8, %c0_9, %c0_10, %c0_11], %26 {strides = array<i32>} : memref<1x4x8x8xf32, #tpu.memory_space<vmem>>, vector<1x1x8x8xf32>,
    %27 = arith.truncf %23 : vector<8x8xf32> to vector<8x8xbf16>
    %28 = arith.truncf %8 : vector<8x8xf32> to vector<8x8xbf16>
    %cst_12 = arith.constant dense<0.000000e+00> : vector<8x8xf32>
    %29 = tpu.matmul %27, %28, %cst_12 {dimension_numbers = #tpu.dot_dimension_numbers<[1], [0], [0], [1], [0, 0, 1, 1], [], []>} : vector<8x8xbf16>, vector<8x8xbf16>, vector<8x8xf32> -> vector<8x8xf32>
    %30 = vector.extract_strided_slice %3 {offsets = [0, 8], sizes = [8, 8], strides = [1, 1]} : vector<8x32xf32> to vector<8x8xf32>
    %31 = vector.extract_strided_slice %4 {offsets = [0, 8], sizes = [8, 8], strides = [1, 1]} : vector<8x32xf32> to vector<8x8xf32>
    %32 = vector.extract_strided_slice %5 {offsets = [0, 8], sizes = [8, 8], strides = [1, 1]} : vector<8x32xf32> to vector<8x8xf32>
    %33 = arith.truncf %30 : vector<8x8xf32> to vector<8x8xbf16>
    %34 = arith.truncf %31 : vector<8x8xf32> to vector<8x8xbf16>
    %cst_13 = arith.constant dense<0.000000e+00> : vector<8x8xf32>
    %35 = tpu.matmul %33, %34, %cst_13 {dimension_numbers = #tpu.dot_dimension_numbers<[1], [1], [0], [0], [0, 0, 1, 0], [], []>} : vector<8x8xbf16>, vector<8x8xbf16>, vector<8x8xf32> -> vector<8x8xf32>
    %cst_14 = arith.constant 0.353553385 : f32
    %36 = vector.broadcast %cst_14 : f32 to vector<8x8xf32>
    %37 = arith.mulf %35, %36 : vector<8x8xf32>
    %cst_15 = arith.constant dense<0xFF800000> : vector<8xf32>
    %38 = vector.multi_reduction <maximumf>, %37, %cst_15 [1] : vector<8x8xf32> to vector<8xf32>
    %39 = vector.shape_cast %38 : vector<8xf32> to vector<8x1xf32>
    %40 = vector.broadcast %39 : vector<8x1xf32> to vector<8x8xf32>
    %41 = arith.subf %37, %40 : vector<8x8xf32>
    %42 = math.exp %41 : vector<8x8xf32>
    %cst_16 = arith.constant dense<0.000000e+00> : vector<8xf32>
    %43 = vector.multi_reduction <add>, %42, %cst_16 [1] : vector<8x8xf32> to vector<8xf32>
    %44 = vector.shape_cast %43 : vector<8xf32> to vector<8x1xf32>
    %45 = tpu.reciprocal %44 {approx = true} : vector<8x1xf32> -> vector<8x1xf32>
    %46 = vector.broadcast %45 : vector<8x1xf32> to vector<8x8xf32>
    %47 = arith.mulf %42, %46 : vector<8x8xf32>
    %c0_17 = arith.constant 0 : index
    %c1 = arith.constant 1 : index
    %c0_18 = arith.constant 0 : index
    %c0_19 = arith.constant 0 : index
    %48 = vector.load %arg4[%c0_17, %c1, %c0_18, %c0_19] : memref<1x4x8x8xf32, #tpu.memory_space<vmem>>, vector<1x1x8x8xf32>
    %49 = vector.shape_cast %48 : vector<1x1x8x8xf32> to vector<8x8xf32>
    %50 = vector.shape_cast %47 : vector<8x8xf32> to vector<1x1x8x8xf32>
    tpu.vector_store %arg4[%c0_17, %c1, %c0_18, %c0_19], %50 {strides = array<i32>} : memref<1x4x8x8xf32, #tpu.memory_space<vmem>>, vector<1x1x8x8xf32>,
    %51 = arith.truncf %47 : vector<8x8xf32> to vector<8x8xbf16>
    %52 = arith.truncf %32 : vector<8x8xf32> to vector<8x8xbf16>
    %cst_20 = arith.constant dense<0.000000e+00> : vector<8x8xf32>
    %53 = tpu.matmul %51, %52, %cst_20 {dimension_numbers = #tpu.dot_dimension_numbers<[1], [0], [0], [1], [0, 0, 1, 1], [], []>} : vector<8x8xbf16>, vector<8x8xbf16>, vector<8x8xf32> -> vector<8x8xf32>
    %54 = vector.extract_strided_slice %3 {offsets = [0, 16], sizes = [8, 8], strides = [1, 1]} : vector<8x32xf32> to vector<8x8xf32>
    %55 = vector.extract_strided_slice %4 {offsets = [0, 16], sizes = [8, 8], strides = [1, 1]} : vector<8x32xf32> to vector<8x8xf32>
    %56 = vector.extract_strided_slice %5 {offsets = [0, 16], sizes = [8, 8], strides = [1, 1]} : vector<8x32xf32> to vector<8x8xf32>
    %57 = arith.truncf %54 : vector<8x8xf32> to vector<8x8xbf16>
    %58 = arith.truncf %55 : vector<8x8xf32> to vector<8x8xbf16>
    %cst_21 = arith.constant dense<0.000000e+00> : vector<8x8xf32>
    %59 = tpu.matmul %57, %58, %cst_21 {dimension_numbers = #tpu.dot_dimension_numbers<[1], [1], [0], [0], [0, 0, 1, 0], [], []>} : vector<8x8xbf16>, vector<8x8xbf16>, vector<8x8xf32> -> vector<8x8xf32>
    %cst_22 = arith.constant 0.353553385 : f32
    %60 = vector.broadcast %cst_22 : f32 to vector<8x8xf32>
    %61 = arith.mulf %59, %60 : vector<8x8xf32>
    %cst_23 = arith.constant dense<0xFF800000> : vector<8xf32>
    %62 = vector.multi_reduction <maximumf>, %61, %cst_23 [1] : vector<8x8xf32> to vector<8xf32>
    %63 = vector.shape_cast %62 : vector<8xf32> to vector<8x1xf32>
    %64 = vector.broadcast %63 : vector<8x1xf32> to vector<8x8xf32>
    %65 = arith.subf %61, %64 : vector<8x8xf32>
    %66 = math.exp %65 : vector<8x8xf32>
    %cst_24 = arith.constant dense<0.000000e+00> : vector<8xf32>
    %67 = vector.multi_reduction <add>, %66, %cst_24 [1] : vector<8x8xf32> to vector<8xf32>
    %68 = vector.shape_cast %67 : vector<8xf32> to vector<8x1xf32>
    %69 = tpu.reciprocal %68 {approx = true} : vector<8x1xf32> -> vector<8x1xf32>
    %70 = vector.broadcast %69 : vector<8x1xf32> to vector<8x8xf32>
    %71 = arith.mulf %66, %70 : vector<8x8xf32>
    %c0_25 = arith.constant 0 : index
    %c2 = arith.constant 2 : index
    %c0_26 = arith.constant 0 : index
    %c0_27 = arith.constant 0 : index
    %72 = vector.load %arg4[%c0_25, %c2, %c0_26, %c0_27] : memref<1x4x8x8xf32, #tpu.memory_space<vmem>>, vector<1x1x8x8xf32>
    %73 = vector.shape_cast %72 : vector<1x1x8x8xf32> to vector<8x8xf32>
    %74 = vector.shape_cast %71 : vector<8x8xf32> to vector<1x1x8x8xf32>
    tpu.vector_store %arg4[%c0_25, %c2, %c0_26, %c0_27], %74 {strides = array<i32>} : memref<1x4x8x8xf32, #tpu.memory_space<vmem>>, vector<1x1x8x8xf32>,
    %75 = arith.truncf %71 : vector<8x8xf32> to vector<8x8xbf16>
    %76 = arith.truncf %56 : vector<8x8xf32> to vector<8x8xbf16>
    %cst_28 = arith.constant dense<0.000000e+00> : vector<8x8xf32>
    %77 = tpu.matmul %75, %76, %cst_28 {dimension_numbers = #tpu.dot_dimension_numbers<[1], [0], [0], [1], [0, 0, 1, 1], [], []>} : vector<8x8xbf16>, vector<8x8xbf16>, vector<8x8xf32> -> vector<8x8xf32>
    %78 = vector.extract_strided_slice %3 {offsets = [0, 24], sizes = [8, 8], strides = [1, 1]} : vector<8x32xf32> to vector<8x8xf32>
    %79 = vector.extract_strided_slice %4 {offsets = [0, 24], sizes = [8, 8], strides = [1, 1]} : vector<8x32xf32> to vector<8x8xf32>
    %80 = vector.extract_strided_slice %5 {offsets = [0, 24], sizes = [8, 8], strides = [1, 1]} : vector<8x32xf32> to vector<8x8xf32>
    %81 = arith.truncf %78 : vector<8x8xf32> to vector<8x8xbf16>
    %82 = arith.truncf %79 : vector<8x8xf32> to vector<8x8xbf16>
    %cst_29 = arith.constant dense<0.000000e+00> : vector<8x8xf32>
    %83 = tpu.matmul %81, %82, %cst_29 {dimension_numbers = #tpu.dot_dimension_numbers<[1], [1], [0], [0], [0, 0, 1, 0], [], []>} : vector<8x8xbf16>, vector<8x8xbf16>, vector<8x8xf32> -> vector<8x8xf32>
    %cst_30 = arith.constant 0.353553385 : f32
    %84 = vector.broadcast %cst_30 : f32 to vector<8x8xf32>
    %85 = arith.mulf %83, %84 : vector<8x8xf32>
    %cst_31 = arith.constant dense<0xFF800000> : vector<8xf32>
    %86 = vector.multi_reduction <maximumf>, %85, %cst_31 [1] : vector<8x8xf32> to vector<8xf32>
    %87 = vector.shape_cast %86 : vector<8xf32> to vector<8x1xf32>
    %88 = vector.broadcast %87 : vector<8x1xf32> to vector<8x8xf32>
    %89 = arith.subf %85, %88 : vector<8x8xf32>
    %90 = math.exp %89 : vector<8x8xf32>
    %cst_32 = arith.constant dense<0.000000e+00> : vector<8xf32>
    %91 = vector.multi_reduction <add>, %90, %cst_32 [1] : vector<8x8xf32> to vector<8xf32>
    %92 = vector.shape_cast %91 : vector<8xf32> to vector<8x1xf32>
    %93 = tpu.reciprocal %92 {approx = true} : vector<8x1xf32> -> vector<8x1xf32>
    %94 = vector.broadcast %93 : vector<8x1xf32> to vector<8x8xf32>
    %95 = arith.mulf %90, %94 : vector<8x8xf32>
    %c0_33 = arith.constant 0 : index
    %c3 = arith.constant 3 : index
    %c0_34 = arith.constant 0 : index
    %c0_35 = arith.constant 0 : index
    %96 = vector.load %arg4[%c0_33, %c3, %c0_34, %c0_35] : memref<1x4x8x8xf32, #tpu.memory_space<vmem>>, vector<1x1x8x8xf32>
    %97 = vector.shape_cast %96 : vector<1x1x8x8xf32> to vector<8x8xf32>
    %98 = vector.shape_cast %95 : vector<8x8xf32> to vector<1x1x8x8xf32>
    tpu.vector_store %arg4[%c0_33, %c3, %c0_34, %c0_35], %98 {strides = array<i32>} : memref<1x4x8x8xf32, #tpu.memory_space<vmem>>, vector<1x1x8x8xf32>,
    %99 = arith.truncf %95 : vector<8x8xf32> to vector<8x8xbf16>
    %100 = arith.truncf %80 : vector<8x8xf32> to vector<8x8xbf16>
    %cst_36 = arith.constant dense<0.000000e+00> : vector<8x8xf32>
    %101 = tpu.matmul %99, %100, %cst_36 {dimension_numbers = #tpu.dot_dimension_numbers<[1], [0], [0], [1], [0, 0, 1, 1], [], []>} : vector<8x8xbf16>, vector<8x8xbf16>, vector<8x8xf32> -> vector<8x8xf32>
    %102 = tpu.concatenate %29, %53, %77, %101 in 1 : vector<8x8xf32>, vector<8x8xf32>, vector<8x8xf32>, vector<8x8xf32> -> vector<8x32xf32>
    %c0_37 = arith.constant 0 : index
    %c0_38 = arith.constant 0 : index
    %c0_39 = arith.constant 0 : index
    %103 = vector.load %arg3[%c0_37, %c0_38, %c0_39] : memref<1x8x32xf32, #tpu.memory_space<vmem>>, vector<1x8x32xf32>
    %104 = vector.shape_cast %103 : vector<1x8x32xf32> to vector<8x32xf32>
    %105 = vector.shape_cast %102 : vector<8x32xf32> to vector<1x8x32xf32>
    tpu.vector_store %arg3[%c0_37, %c0_38, %c0_39], %105 {strides = array<i32>} : memref<1x8x32xf32, #tpu.memory_space<vmem>>, vector<1x8x32xf32>,
    return
  }
  func.func @transform_0(%arg0: i32) -> (i32, i32, i32) {
    %c0_i32 = arith.constant 0 : i32
    %c0_i32_0 = arith.constant 0 : i32
    %c0_i32_1 = arith.constant 0 : i32
    return %arg0, %c0_i32, %c0_i32_0 : i32, i32, i32
  }
  func.func @transform_1(%arg0: i32) -> (i32, i32, i32) {
    %c0_i32 = arith.constant 0 : i32
    %c0_i32_0 = arith.constant 0 : i32
    %c0_i32_1 = arith.constant 0 : i32
    return %arg0, %c0_i32, %c0_i32_0 : i32, i32, i32
  }
  func.func @transform_2(%arg0: i32) -> (i32, i32, i32) {
    %c0_i32 = arith.constant 0 : i32
    %c0_i32_0 = arith.constant 0 : i32
    %c0_i32_1 = arith.constant 0 : i32
    return %arg0, %c0_i32, %c0_i32_0 : i32, i32, i32
  }
  func.func @transform_3(%arg0: i32) -> (i32, i32, i32, i32) {
    %c0_i32 = arith.constant 0 : i32
    %c0_i32_0 = arith.constant 0 : i32
    %c0_i32_1 = arith.constant 0 : i32
    %c0_i32_2 = arith.constant 0 : i32
    return %arg0, %c0_i32, %c0_i32_0, %c0_i32_1 : i32, i32, i32, i32
  }
}

</mosaic_0001>

<bundles_post_ra>
// kernel: decoder_layer_forward.11
= control target key start
LH: loop header
LB: loop body
LE: loop exit
PB: predicated region body
PF: predicated region fallthrough
CT: control target
= control target key end

     0   :  { %vm19_vm0 = vcmask 261120   ;;  %v117_v0 = vmov 0.0   ;;  %vm118_vm1 = vmmov 0   ;;  %s173_s1 = inlined_call_operand.vmem [shape: f32[32,32], index: 1, kind: input, shape index: {}]   ;;  %s174_s0 = inlined_call_operand.vmem [shape: f32[16,32], index: 0, kind: input, shape index: {}]   ;;  %s175_s2 = inlined_call_operand.vmem [shape: f32[1,32], index: 2, kind: input, shape index: {}]   ;;  %s176_s3 = inlined_call_operand.vmem [shape: f32[16,32], index: 3, kind: output, shape index: {}]  }
   0x1   :  { %107 = vmatprep.subr.bf16.mxu0 %v117_v0  ;;  %v27_v1 = vld [vmem:[%s173_s1] sm:$0xff]  ;;  %v28_v2 = vld [vmem:[%s173_s1 + $0x8] sm:$0xff]  ;;  %v29_v3 = vld [vmem:[%s173_s1 + $0x10] sm:$0xff]  ;;  %111 = vmatprep.mubr.msk.bf16.mxu0 %vm118_vm1, %v117_v0  ;;  %20 = vst.msk [vmem:[#allocation2] sm:$0xff] %vm19_vm0, %v117_v0 }
   0x2   :  { %21 = vst.msk [vmem:[#allocation2 + $0x8] sm:$0xff] %vm19_vm0, %v117_v0  ;;  %v31_v4 = vpack.c.bf16 %v28_v2, %v27_v1  ;;  %v30_v5 = vld [vmem:[%s173_s1 + $0x18] sm:$0xff]  ;;  %v24_v7 = vld [vmem:[%s174_s0] sm:$0xff]  ;;  %v25_v8 = vld [vmem:[%s174_s0 + $0x8] sm:$0xff] }
   0x3   :  { %v32_v6 = vpack.c.bf16 %v30_v5, %v29_v3  ;;  %v26_v9 = vpack.c.bf16 %v25_v8, %v24_v7  ;;  %v103_v18 = vld [vmem:[%s175_s2] ss:$0 sm:$0xff] }
   0x4   :  { %108 = vmatpush3.bf16.msra.mxu0 %v31_v4 }
   0x5   :  { %109 = vmatprep.subr.bf16.mxu0 %v117_v0 }
   0x8   :  { %110 = vmatpush3.bf16.msra.mxu0 %v32_v6  ;;  %v22_v10 = vld [vmem:[#allocation2] sm:$0xff] }
   0x9   :  { %v23_v12 = vld [vmem:[#allocation2 + $0x8] sm:$0xff] }
   0xb   :  { %112 = vmatmul.mubr.msk.bf16.vlgmr.msra.gmra.mrb[0].mxu0 %vm19_vm0, %v26_v9 }
  0xde   :  { %v71_v11 = vpop.f32.mrb[0].mxu0 }
  0xdf   :  { %v78_v13 = vadd.f32 %v71_v11, %v22_v10  ;;  %v113_v14 = vpop.f32.mrb[1].mxu0 }
  0xe0   :  { %v74_v15 = vpop.f32.mrb[2].mxu0 }
  0xe1   :  { %80 = vst.msk [vmem:[#allocation2] sm:$0xff] %vm19_vm0, %v78_v13  ;;  %v79_v16 = vadd.f32 %v74_v15, %v23_v12  ;;  %v114_v17 = vpop.f32.mrb[3].mxu0 }
  0xe3   :  { %81 = vst.msk [vmem:[#allocation2 + $0x8] sm:$0xff] %vm19_vm0, %v79_v16 }
  0xe8   :  { %v85_v19 = vld [vmem:[#allocation2] sm:$0xff] }
  0xe9   :  { %v94_v20 = vadd.f32 %v103_v18, %v85_v19 }
  0xea   :  { %v86_v21 = vld [vmem:[#allocation2 + $0x8] sm:$0xff] }
  0xeb   :  { %96 = vst.msk [vmem:[%s176_s3] sm:$0xff] %vm19_vm0, %v94_v20  ;;  %v95_v22 = vadd.f32 %v103_v18, %v86_v21 }
  0xed   :  { %97 = vst.msk [vmem:[%s176_s3 + $0x8] sm:$0xff] %vm19_vm0, %v95_v22 }

// kernel: decoder_layer_forward.8
= control target key start
LH: loop header
LB: loop body
LE: loop exit
PB: predicated region body
PF: predicated region fallthrough
CT: control target
= control target key end

     0   :  { %vm19_vm0 = vcmask 785408   ;;  %v118_v0 = vmov 0.0   ;;  %vm119_vm1 = vmmov 0   ;;  %vm33_vm2 = vcmask 261120   ;;  %s173_s1 = inlined_call_operand.vmem [shape: f32[32,96], index: 1, kind: input, shape index: {}]   ;;  %s174_s0 = inlined_call_operand.vmem [shape: f32[16,32], index: 0, kind: input, shape index: {}]   ;;  %s175_s2 = inlined_call_operand.vmem [shape: f32[1,96], index: 2, kind: input, shape index: {}]   ;;  %s176_s3 = inlined_call_operand.vmem [shape: f32[16,96], index: 3, kind: output, shape index: {}]  }
   0x1   :  { %108 = vmatprep.subr.bf16.mxu0 %v118_v0  ;;  %v27_v1 = vld [vmem:[%s173_s1] sm:$0xff]  ;;  %v28_v2 = vld [vmem:[%s173_s1 + $0x8] sm:$0xff]  ;;  %v29_v3 = vld [vmem:[%s173_s1 + $0x10] sm:$0xff]  ;;  %112 = vmatprep.mubr.msk.bf16.mxu0 %vm119_vm1, %v118_v0  ;;  %20 = vst.msk [vmem:[#allocation2] sm:$0xff] %vm19_vm0, %v118_v0 }
   0x2   :  { %21 = vst.msk [vmem:[#allocation2 + $0x8] sm:$0xff] %vm19_vm0, %v118_v0  ;;  %v31_v4 = vpack.c.bf16 %v28_v2, %v27_v1  ;;  %v30_v5 = vld [vmem:[%s173_s1 + $0x18] sm:$0xff]  ;;  %v24_v7 = vld [vmem:[%s174_s0] sm:$0xff]  ;;  %v25_v8 = vld [vmem:[%s174_s0 + $0x8] sm:$0xff] }
   0x3   :  { %v32_v6 = vpack.c.bf16 %v30_v5, %v29_v3  ;;  %v26_v9 = vpack.c.bf16 %v25_v8, %v24_v7  ;;  %v104_v18 = vld [vmem:[%s175_s2] ss:$0 sm:$0xff] }
   0x4   :  { %109 = vmatpush3.bf16.msra.mxu0 %v31_v4 }
   0x5   :  { %110 = vmatprep.subr.bf16.mxu0 %v118_v0 }
   0x8   :  { %111 = vmatpush3.bf16.msra.mxu0 %v32_v6  ;;  %v22_v10 = vld [vmem:[#allocation2] sm:$0xff] }
   0x9   :  { %v23_v12 = vld [vmem:[#allocation2 + $0x8] sm:$0xff] }
   0xb   :  { %113 = vmatmul.mubr.msk.bf16.vlgmr.msra.gmra.mrb[0].mxu0 %vm33_vm2, %v26_v9 }
  0xde   :  { %v71_v11 = vpop.f32.mrb[0].mxu0 }
  0xdf   :  { %v78_v13 = vadd.f32 %v71_v11, %v22_v10  ;;  %v114_v14 = vpop.f32.mrb[1].mxu0 }
  0xe0   :  { %v74_v15 = vpop.f32.mrb[2].mxu0 }
  0xe1   :  { %81 = vst.msk [vmem:[#allocation2] sm:$0xff] %vm19_vm0, %v78_v13  ;;  %v79_v16 = vadd.f32 %v74_v15, %v23_v12  ;;  %v115_v17 = vpop.f32.mrb[3].mxu0 }
  0xe3   :  { %82 = vst.msk [vmem:[#allocation2 + $0x8] sm:$0xff] %vm19_vm0, %v79_v16 }
  0xe8   :  { %v86_v19 = vld [vmem:[#allocation2] sm:$0xff] }
  0xe9   :  { %v95_v20 = vadd.f32 %v104_v18, %v86_v19 }
  0xea   :  { %v87_v21 = vld [vmem:[#allocation2 + $0x8] sm:$0xff] }
  0xeb   :  { %97 = vst.msk [vmem:[%s176_s3] sm:$0xff] %vm19_vm0, %v95_v20  ;;  %v96_v22 = vadd.f32 %v104_v18, %v87_v21 }
  0xed   :  { %98 = vst.msk [vmem:[%s176_s3 + $0x8] sm:$0xff] %vm19_vm0, %v96_v22 }

// kernel: decoder_layer_forward.10
= control target key start
LH: loop header
LB: loop body
LE: loop exit
PB: predicated region body
PF: predicated region fallthrough
CT: control target
= control target key end

     0   :  { %vm28_vm0 = vcmask 261120   ;;  %v181_v0 = vmov 0.0   ;;  %vm182_vm1 = vmmov 0   ;;  %s268_s1 = inlined_call_operand.vmem [shape: f32[32,32], index: 1, kind: input, shape index: {}]   ;;  %s269_s0 = inlined_call_operand.vmem [shape: f32[16,32], index: 0, kind: input, shape index: {}]   ;;  %s270_s2 = inlined_call_operand.vmem [shape: f32[1,32], index: 2, kind: input, shape index: {}]   ;;  %s271_s3 = inlined_call_operand.vmem [shape: f32[16,32], index: 3, kind: input, shape index: {}]   ;;  %s272_s4 = inlined_call_operand.vmem [shape: f32[1,32], index: 4, kind: input, shape index: {}]   ;;  %s273_s5 = inlined_call_operand.vmem [shape: f32[1,32], index: 5, kind: input, shape index: {}]   ;;  %s274_s6 = inlined_call_operand.vmem [shape: f32[16,32], index: 6, kind: output, shape index: {}]  }
   0x1   :  { %167 = vmatprep.subr.bf16.mxu0 %v181_v0  ;;  %v36_v1 = vld [vmem:[%s268_s1] sm:$0xff]  ;;  %v37_v2 = vld [vmem:[%s268_s1 + $0x8] sm:$0xff]  ;;  %v38_v3 = vld [vmem:[%s268_s1 + $0x10] sm:$0xff]  ;;  %171 = vmatprep.mubr.msk.bf16.mxu0 %vm182_vm1, %v181_v0  ;;  %29 = vst.msk [vmem:[#allocation2] sm:$0xff] %vm28_vm0, %v181_v0 }
   0x2   :  { %30 = vst.msk [vmem:[#allocation2 + $0x8] sm:$0xff] %vm28_vm0, %v181_v0  ;;  %v40_v4 = vpack.c.bf16 %v37_v2, %v36_v1  ;;  %v39_v5 = vld [vmem:[%s268_s1 + $0x18] sm:$0xff]  ;;  %v33_v7 = vld [vmem:[%s269_s0] sm:$0xff]  ;;  %v34_v8 = vld [vmem:[%s269_s0 + $0x8] sm:$0xff] }
   0x3   :  { %v41_v6 = vpack.c.bf16 %v39_v5, %v38_v3  ;;  %v35_v9 = vpack.c.bf16 %v34_v8, %v33_v7  ;;  %v161_v18 = vld [vmem:[%s270_s2] ss:$0 sm:$0xff]  ;;  %v106_v23 = vld [vmem:[%s271_s3 + $0x8] sm:$0xff] }
   0x4   :  { %168 = vmatpush3.bf16.msra.mxu0 %v40_v4  ;;  %v105_v20 = vld [vmem:[%s271_s3] sm:$0xff] }
   0x5   :  { %169 = vmatprep.subr.bf16.mxu0 %v181_v0  ;;  %v162_v46 = vld [vmem:[%s272_s4] ss:$0 sm:$0xff] }
   0x6   :  { %v163_v48 = vld [vmem:[%s273_s5] ss:$0 sm:$0xff] }
   0x8   :  { %170 = vmatpush3.bf16.msra.mxu0 %v41_v6  ;;  %v31_v10 = vld [vmem:[#allocation2] sm:$0xff] }
   0x9   :  { %v32_v12 = vld [vmem:[#allocation2 + $0x8] sm:$0xff] }
   0xb   :  { %172 = vmatmul.mubr.msk.bf16.vlgmr.msra.gmra.mrb[0].mxu0 %vm28_vm0, %v35_v9 }
  0xde   :  { %v80_v11 = vpop.f32.mrb[0].mxu0 }
  0xdf   :  { %v87_v13 = vadd.f32 %v80_v11, %v31_v10  ;;  %v173_v14 = vpop.f32.mrb[1].mxu0 }
  0xe0   :  { %v83_v15 = vpop.f32.mrb[2].mxu0 }
  0xe1   :  { %89 = vst.msk [vmem:[#allocation2] sm:$0xff] %vm28_vm0, %v87_v13  ;;  %v88_v16 = vadd.f32 %v83_v15, %v32_v12  ;;  %v174_v17 = vpop.f32.mrb[3].mxu0 }
  0xe3   :  { %90 = vst.msk [vmem:[#allocation2 + $0x8] sm:$0xff] %vm28_vm0, %v88_v16 }
  0xe8   :  { %v94_v19 = vld [vmem:[#allocation2] sm:$0xff] }
  0xe9   :  { %v103_v21 = vadd.f32 %v161_v18, %v94_v19 }
  0xea   :  { %v95_v22 = vld [vmem:[#allocation2 + $0x8] sm:$0xff] }
  0xeb   :  { %v107_v24 = vadd.f32 %v105_v20, %v103_v21  ;;  %v104_v25 = vadd.f32 %v161_v18, %v95_v22 }
  0xed   :  { %v109_v26 = vsel %vm28_vm0, %v107_v24, 0.0  ;;  %v108_v27 = vadd.f32 %v106_v23, %v104_v25 }
  0xee   :  { %110 = vadd.xlane.f32.xlu0 %v109_v26 }
  0xef   :  { %v112_v28 = vsel %vm28_vm0, %v108_v27, 0.0 }
  0xf2   :  { %113 = vadd.xlane.f32.xlu0 %v112_v28 }
 0x17b   :  { %v111_v29 = vpop.xlane.xlu0 %110 }
 0x17c   :  { %v116_v30 = vmul.f32 0.03125, %v111_v29 }
 0x17e   :  { %v118_v31 = vsub.f32 %v107_v24, %v116_v30 }
 0x17f   :  { %v114_v32 = vpop.xlane.xlu0 %113 }
 0x180   :  { %v117_v33 = vmul.f32 0.03125, %v114_v32  ;;  %v120_v34 = vmul.f32 %v118_v31, %v118_v31 }
 0x182   :  { %v119_v35 = vsub.f32 %v108_v27, %v117_v33  ;;  %v122_v36 = vsel %vm28_vm0, %v120_v34, 0.0 }
 0x183   :  { %123 = vadd.xlane.f32.xlu1 %v122_v36 }
 0x184   :  { %v121_v37 = vmul.f32 %v119_v35, %v119_v35 }
 0x186   :  { %v125_v38 = vsel %vm28_vm0, %v121_v37, 0.0 }
 0x187   :  { %126 = vadd.xlane.f32.xlu1 %v125_v38 }
 0x210   :  { %v124_v39 = vpop.xlane.xlu1 %123 }
 0x211   :  { %v128_v40 = vmul.f32 0.03125, %v124_v39 }
 0x213   :  { %v130_v41 = vadd.f32 1e-05, %v128_v40 }
 0x214   :  { %v127_v42 = vpop.xlane.xlu1 %126 }
 0x215   :  { %177 = vrsqrt.f32 %v130_v41  ;;  %v129_v43 = vmul.f32 0.03125, %v127_v42 }
 0x217   :  { %v131_v44 = vadd.f32 1e-05, %v129_v43 }
 0x219   :  { %179 = vrsqrt.f32 %v131_v44 }
 0x21f   :  { %v178_v45 = vpop.eup %177 }
 0x220   :  { %v134_v47 = vmul.f32 %v178_v45, %v118_v31 }
 0x222   :  { %v143_v49 = vmul.f32 %v162_v46, %v134_v47 }
 0x223   :  { %v180_v50 = vpop.eup %179 }
 0x224   :  { %v152_v51 = vadd.f32 %v163_v48, %v143_v49  ;;  %v135_v52 = vmul.f32 %v180_v50, %v119_v35 }
 0x226   :  { %154 = vst.msk [vmem:[%s274_s6] sm:$0xff] %vm28_vm0, %v152_v51  ;;  %v144_v53 = vmul.f32 %v162_v46, %v135_v52 }
 0x228   :  { %v153_v54 = vadd.f32 %v163_v48, %v144_v53 }
 0x22a   :  { %155 = vst.msk [vmem:[%s274_s6 + $0x8] sm:$0xff] %vm28_vm0, %v153_v54 }

// kernel: decoder_layer_forward.9
= control target key start
LH: loop header
LB: loop body
LE: loop exit
PB: predicated region body
PF: predicated region fallthrough
CT: control target
= control target key end

     0   :  { %8 = vsyncpa [#allocation3], 0  ;;  %s1184_s0 = inlined_call_operand.vmem [shape: f32[2,8,96], index: 0, kind: input, shape index: {}]   ;;  %s1185_s1 = inlined_call_operand.vmem [shape: f32[2,8,32], index: 1, kind: output, shape index: {0}]   ;;  %s1186_s2 = inlined_call_operand.hbm [shape: f32[2,4,8,8], index: 2, kind: output, shape index: {1}]  }
   0x1   :  { %10 = vsyncpa [#allocation3 + $0x1], 0  ;;  %s988_s9 = smov 0   ;;  %s990_s10 = smov 0  }
   0x2   :  { %s992_s11 = smov 0   ;;  %s994_s12 = smov 0  }
   0x3 LB: > { %s1009_s13 = sadd.s32 4294967295, %s953_s12   ;;  %s731_s14 = sadd.s32 4294967294, %s953_s12   ;;  %s953_s12 = sphi %s994_s12, %s1192_s12   ;;  %s949_s11 = sphi %s992_s11, %s1191_s11   ;;  %s945_s10 = sphi %s990_s10, %s1190_s10   ;;  %s941_s9 = sphi %s988_s9, %s1189_s9  }
   0x4   : > { %s1013_s15 = sadd.s32 1, %s953_s12   ;;  %s75_s16 = sadd.s32 1, %s949_s11 }
   0x5   : > { %s72_s17 = ssub.s32 %s953_s12, %s1013_s15  ;;  %p85_p0 = scmp.ne.s32.totalorder %s949_s11, %s945_s10 }
   0x6   : > { %p73_p1 = scmp.eq.s32.totalorder %s72_s17, 0  ;;  %p86_p2 = scmp.eq.s32.totalorder %s1009_s13, 1 }
   0x7   : > { %p91_p3 = scmp.ne.s32.totalorder %s945_s10, %s941_s9  ;;  %p92_p4 = scmp.eq.s32.totalorder %s731_s14, 1 }
   0x8   : > { %s1024_s18 = scalar_select %p73_p1, %s949_s11, %s75_s16  }
   0x9   : > { %p1026_p5 = por %p86_p2, %p85_p0  ;;  %p1030_p6 = por %p92_p4, %p91_p3 }
   0xa   : > { %p734_p7 = scmp.ge.s32.totalorder %s953_s12, 1  ;;  %p117_p8 = scmp.lt.s32.totalorder %s953_s12, 3 }
   0xc   : > { %p118_p9 = pnand %p734_p7, %p117_p8 }
   0xd   : > { %p142_p10 = scmp.lt.s32.totalorder (!%p118_p9), %s1009_s13, 1  ;;  %v955_v0 = vmov (!%p118_p9), 0.0   ;;  %vm956_vm0 = vmmov (!%p118_p9), 0   ;;  %s957_s26 = smov (!%p118_p9), 96   ;;  %vm156_vm1 = vcmask (!%p118_p9), 64512   ;;  %vm222_vm2 = vcmask (!%p118_p9), 1043456  }
   0xe   : > { %121 = sbr.rel (%p118_p9) target bundleno = 1609 (0x649), region = 24  ;;  %771 = vmatprep.subr.bf16.mxu0 (!%p118_p9), %v955_v0  ;;  %773 = vmatprep.mubr.msk.bf16.mxu0 (!%p118_p9), %vm956_vm0, %v955_v0  ;;  %s958_s27 = smov (!%p118_p9), 64  }
   0xf   : > { %777 = vmatprep.subr.bf16.mxu1 (!%p118_p9), %v955_v0  ;;  %779 = vmatprep.mubr.msk.bf16.mxu1 (!%p118_p9), %vm956_vm0, %v955_v0  ;;  %s959_s28 = smov (!%p118_p9), 88   ;;  %s960_s29 = smov (!%p118_p9), 72  }
  0x10   : > { %s961_s30 = smov (!%p118_p9), 120   ;;  %s962_s3 = smov (!%p118_p9), 80  }
  0x11   : > { %s963_s4 = smov (!%p118_p9), 112   ;;  %s964_s5 = smov (!%p118_p9), 104  }
  0x12   : > { %s139_s6 = sand.u32 (!%p118_p9), 1, %s945_s10   ;;  %s965_s14 = smov (!%p118_p9), 56  }
  0x13   : > { %s735_s7 = sshll.u32 (!%p118_p9), %s139_s6, 5  ;;  %s966_s16 = smov (!%p118_p9), 48  }
  0x14   : > { %s1075_s8 = scalar_lea.vmem (!%p118_p9), [#allocation2], %s735_s7  ;;  %s967_s17 = smov (!%p118_p9), 40  }
  0x15   : > { %s1041_s21 = scalar_select %p142_p10, %s1009_s13, 1 }
  0x16   : > { %s968_s23 = smov 8   ;;  %s754_s24 = sshll.u32 %s1009_s13, 9 }
  0x17   : > { %s736_s22 = sshll.u32 %s1041_s21, 3  ;;  %s969_s13 = smov [#allocation2]  }
  0x18   : > { %s145_s25 = scalar_lea.vmem %s1184_s0, %s736_s22 }
  0x19   : > { %v151_v1 = vld [vmem:[%s145_s25] sm:$0xff]  ;;  %s645_s25 = sshll.u32 %s1075_s8, 4  ;;  %s1131_s25 = int_to_ptr.vmem [resolvable:$true] %s645_s25 }
  0x1a   : > { %v1052_v2 = vpack.c.bf16 %v151_v1, %v151_v1 }
  0x1c   : > { %154 = vrot.lane.b32.xlu0 %v1052_v2, %s957_s26  ;;  %217 = vrot.lane.b32.xlu1 %v1052_v2, %s958_s27 }
  0x20   : > { %268 = vrot.lane.b32.xlu1 %v1052_v2, %s959_s28  ;;  %s1129_s28 = scalar_lea.hbm %s1186_s2, %s754_s24 }
  0x8e   : > { %v155_v3 = vpop.permute.xlu0 %154  ;;  %v218_v11 = vpop.permute.xlu1 %217 }
  0x8f   : > { %v161_v4 = vsel %vm156_vm1, %v155_v3, 0  ;;  %v224_v12 = vsel %vm222_vm2, %v218_v11, 0 }
  0x90   : > { %772 = vmatpush3.bf16.xpose.msra.mxu0 %v161_v4  ;;  %778 = vmatpush3.bf16.msra.mxu1 %v224_v12 }
  0x91   : > { %789 = vmatprep.subr.bf16.mxu0 %v955_v0  ;;  %783 = vmatprep.subr.bf16.mxu1 %v955_v0 }
  0x92   : > { %v269_v18 = vpop.permute.xlu1 %268 }
  0x93   : > { %v274_v24 = vsel %vm156_vm1, %v269_v18, 0 }
  0x97   : > { %774 = vmatmul.mubr.msk.bf16.vlgmr.msra.gmra.mrb[0].mxu0 %vm156_vm1, %v1052_v2 }
  0x98   : > { %791 = vmatprep.mubr.msk.bf16.mxu0 %vm956_vm0, %v955_v0 }
 0x16a   : > { %v197_v5 = vpop.f32.mrb[0].mxu0 }
 0x16b   : > { %v203_v6 = vmul.f32 0.35355338, %v197_v5  ;;  %v775_v7 = vpop.f32.mrb[1].mxu0 }
 0x16c   : > { %v200_v8 = vpop.f32.mrb[2].mxu0 }
 0x16d   : > { %v776_v9 = vpop.f32.mrb[3].mxu0  ;;  %v204_v10 = vsel %vm156_vm1, %v203_v6, -inf }
 0x16e   : > { %205 = vmax.xlane.f32.xlu0 %v204_v10 }
 0x184   : > { %494 = vrot.lane.b32.xlu0 %v1052_v2, %s960_s29  ;;  %s1135_s29 = scalar_lea.sflag [#allocation3], %s139_s6 }
 0x1fb   : > { %v206_v13 = vpop.xlane.xlu0 %205 }
 0x1fc   : > { %v207_v14 = vsub.f32 %v203_v6, %v206_v13 }
 0x1fe   : > { %v208_v15 = vmul.f32 1.442695, %v207_v14 }
 0x1ff   : > { %v495_v27 = vpop.permute.xlu0 %494 }
 0x200   : > { %875 = vpow2.f32 %v208_v15  ;;  %v500_v29 = vsel %vm156_vm1, %v495_v27, 0 }
 0x20a   : > { %v876_v16 = vpop.eup %875 }
 0x20b   : > { %v210_v17 = vsel %vm156_vm1, %v876_v16, 0.0 }
 0x20c   : > { %211 = vadd.xlane.f32.xlu1 %v210_v17 }
 0x21d   : > { %266 = vrot.lane.b32.xlu1 %v1052_v2, %s961_s30  ;;  %s891_s30 = scalar_lea.vmem %s1131_s25, 512 }
 0x21e   : > { %p892_p11 = scmp.ne.s32.totalorder %s1131_s25, %s891_s30 }
 0x220   : > { %p893_p12 = pnand %p892_p11, %p1026_p5 }
 0x221   : > { %381 = vrot.lane.b32.xlu1 %v1052_v2, %s962_s3  ;;  %s895_s3 = sshll.u32 %s969_s13, 4  ;;  %s896_s3 = int_to_ptr.vmem [resolvable:$false] %s895_s3 }
 0x222   : > { %p894_p13 = pneg %p893_p12  ;;  %p898_p0 = scmp.lt.s32.totalorder %s1131_s25, %s896_s3 }
 0x225   : > { %379 = vrot.lane.b32.xlu1 %v1052_v2, %s963_s4  ;;  %s897_s4 = scalar_lea.vmem %s896_s3, 1024 }
 0x226   : > { %p899_p1 = scmp.lt.s32.totalorder %s897_s4, %s891_s30 }
 0x228   : > { %p900_p2 = por %p899_p1, %p898_p0 }
 0x229   : > { %492 = vrot.lane.b32.xlu1 %v1052_v2, %s964_s5 }
 0x22a   : > { %p901_p3 = pnand %p900_p2, %p894_p13 }
 0x299   : > { %v212_v19 = vpop.xlane.xlu1 %211 }
 0x29a   : > { %877 = vrcp.f32 %v212_v19 }
 0x29d   : > { %v267_v22 = vpop.permute.xlu1 %266 }
 0x2a1   : > { %v382_v25 = vpop.permute.xlu1 %381 }
 0x2a2   : > { %v387_v26 = vsel %vm156_vm1, %v382_v25, 0 }
 0x2a4   : > { %v878_v20 = vpop.eup %877 }
 0x2a5   : > { %v214_v21 = vmul.f32 %v878_v20, %v876_v16  ;;  %v380_v28 = vpop.permute.xlu1 %379 }
 0x2a7   : > { %215 = vst.msk [vmem:[%s1075_s8] sm:$0xff] %vm156_vm1, %v214_v21  ;;  %v216_v23 = vpack.c.bf16 %v214_v21, %v214_v21 }
 0x2a9   : > { %780 = vmatmul.mubr.msk.bf16.vlgmr.msra.gmra.mrb[0].mxu1 %vm156_vm1, %v216_v23  ;;  %v493_v30 = vpop.permute.xlu1 %492 }
 0x2aa   : > { %784 = vmatpush3.bf16.xpose.msra.mxu1 %v274_v24  ;;  %785 = vmatprep.mubr.msk.bf16.mxu1 %vm956_vm0, %v955_v0 }
 0x2ab   : > { %795 = vmatprep.subr.bf16.mxu1 %v955_v0 }
 0x2b1   : > { %786 = vmatmul.mubr.msk.bf16.vlgmr.msra.gmra.mrb[4].mxu1 %vm156_vm1, %v267_v22 }
 0x2b2   : > { %796 = vmatpush3.bf16.xpose.msra.mxu1 %v387_v26  ;;  %797 = vmatprep.mubr.msk.bf16.mxu1 %vm956_vm0, %v955_v0 }
 0x2b3   : > { %807 = vmatprep.subr.bf16.mxu1 %v955_v0 }
 0x2b9   : > { %798 = vmatmul.mubr.msk.bf16.vlgmr.msra.gmra.mrb[8].mxu1 %vm156_vm1, %v380_v28 }
 0x2ba   : > { %808 = vmatpush3.bf16.xpose.msra.mxu1 %v500_v29  ;;  %809 = vmatprep.mubr.msk.bf16.mxu1 %vm956_vm0, %v955_v0 }
 0x2c1   : > { %810 = vmatmul.mubr.msk.bf16.vlgmr.msra.gmra.mrb[12].mxu1 %vm156_vm1, %v493_v30 }
 0x37c   : > { %v1094_v31 = vpop.f32.mrb[0].mxu1 }
 0x37d   : > { %v781_v32 = vpop.f32.mrb[1].mxu1 }
 0x37e   : > { %v263_v33 = vpop.f32.mrb[2].mxu1 }
 0x37f   : > { %v782_v34 = vpop.f32.mrb[3].mxu1 }
 0x384   : > { %v310_v35 = vpop.f32.mrb[4].mxu1 }
 0x385   : > { %v316_v36 = vmul.f32 0.35355338, %v310_v35  ;;  %v787_v37 = vpop.f32.mrb[5].mxu1 }
 0x386   : > { %v313_v38 = vpop.f32.mrb[6].mxu1 }
 0x387   : > { %v788_v39 = vpop.f32.mrb[7].mxu1  ;;  %v317_v40 = vsel %vm156_vm1, %v316_v36, -inf }
 0x388   : > { %318 = vmax.xlane.f32.xlu1 %v317_v40 }
 0x38c   : > { %v423_v41 = vpop.f32.mrb[8].mxu1 }
 0x38d   : > { %v429_v42 = vmul.f32 0.35355338, %v423_v41  ;;  %v799_v43 = vpop.f32.mrb[9].mxu1 }
 0x38e   : > { %v426_v44 = vpop.f32.mrb[10].mxu1 }
 0x38f   : > { %v430_v45 = vsel %vm156_vm1, %v429_v42, -inf  ;;  %v800_v46 = vpop.f32.mrb[11].mxu1 }
 0x390   : > { %431 = vmax.xlane.f32.xlu0 %v430_v45 }
 0x394   : > { %v536_v47 = vpop.f32.mrb[12].mxu1 }
 0x395   : > { %v542_v48 = vmul.f32 0.35355338, %v536_v47  ;;  %v811_v49 = vpop.f32.mrb[13].mxu1 }
 0x396   : > { %v539_v50 = vpop.f32.mrb[14].mxu1 }
 0x397   : > { %v543_v51 = vsel %vm156_vm1, %v542_v48, -inf  ;;  %v812_v52 = vpop.f32.mrb[15].mxu1 }
 0x398   : > { %544 = vmax.xlane.f32.xlu1 %v543_v51 }
 0x415   : > { %v319_v53 = vpop.xlane.xlu1 %318 }
 0x416   : > { %v320_v54 = vsub.f32 %v316_v36, %v319_v53 }
 0x418   : > { %v321_v55 = vmul.f32 1.442695, %v320_v54 }
 0x41a   : > { %879 = vpow2.f32 %v321_v55 }
 0x41d   : > { %v432_v63 = vpop.xlane.xlu0 %431 }
 0x41e   : > { %v433_v1 = vsub.f32 %v429_v42, %v432_v63 }
 0x420   : > { %v434_v3 = vmul.f32 1.442695, %v433_v1 }
 0x424   : > { %v880_v56 = vpop.eup %879 }
 0x425   : > { %v545_v57 = vpop.xlane.xlu1 %544  ;;  %v323_v58 = vsel %vm156_vm1, %v880_v56, 0.0 }
 0x426   : > { %v546_v59 = vsub.f32 %v542_v48, %v545_v57  ;;  %324 = vadd.xlane.f32.xlu1 %v323_v58 }
 0x428   : > { %v547_v60 = vmul.f32 1.442695, %v546_v59 }
 0x42a   : > { %881 = vpow2.f32 %v547_v60 }
 0x42b   : > { %883 = vpow2.f32 %v434_v3 }
 0x434   : > { %v882_v61 = vpop.eup %881 }
 0x435   : > { %v549_v62 = vsel %vm156_vm1, %v882_v61, 0.0  ;;  %v884_v4 = vpop.eup %883 }
 0x436   : > { %550 = vadd.xlane.f32.xlu0 %v549_v62  ;;  %v436_v5 = vsel %vm156_vm1, %v884_v4, 0.0 }
 0x437   : > { %331 = vrot.lane.b32.xlu1 %v1052_v2, %s965_s14 }
 0x44c   : > { %444 = vrot.lane.b32.xlu0 %v1052_v2, %s966_s16 }
 0x45b   : > { %437 = vadd.xlane.f32.xlu1 %v436_v5 }
 0x46c   : > { %557 = vrot.lane.b32.xlu1 %v1052_v2, %s967_s17 }
 0x4b3   : > { %v325_v6 = vpop.xlane.xlu1 %324 }
 0x4b4   : > { %885 = vrcp.f32 %v325_v6 }
 0x4b7   : > { %v332_v7 = vpop.permute.xlu1 %331 }
 0x4b8   : > { %v337_v8 = vsel %vm222_vm2, %v332_v7, 0 }
 0x4b9   : > { %790 = vmatpush3.bf16.msra.mxu0 %v337_v8 }
 0x4ba   : > { %801 = vmatprep.subr.bf16.mxu0 %v955_v0 }
 0x4be   : > { %v886_v9 = vpop.eup %885 }
 0x4bf   : > { %v327_v10 = vmul.f32 %v886_v9, %v880_v56 }
 0x4c1   : > { %741 = vst.msk [vmem:[%s1075_s8 + $0x8] sm:$0xff] %vm156_vm1, %v327_v10  ;;  %v330_v11 = vpack.c.bf16 %v327_v10, %v327_v10 }
 0x4c3   : > { %792 = vmatmul.mubr.msk.bf16.vlgmr.msra.gmra.mrb[4].mxu0 %vm156_vm1, %v330_v11  ;;  %v551_v12 = vpop.xlane.xlu0 %550 }
 0x4c4   : > { %887 = vrcp.f32 %v551_v12  ;;  %803 = vmatprep.mubr.msk.bf16.mxu0 %vm956_vm0, %v955_v0 }
 0x4c7   : > { %v445_v2 = vpop.permute.xlu0 %444 }
 0x4c8   : > { %v450_v13 = vsel %vm222_vm2, %v445_v2, 0 }
 0x4c9   : > { %802 = vmatpush3.bf16.msra.mxu0 %v450_v13 }
 0x4ca   : > { %813 = vmatprep.subr.bf16.mxu0 %v955_v0 }
 0x4ce   : > { %v888_v14 = vpop.eup %887 }
 0x4cf   : > { %v553_v15 = vmul.f32 %v888_v14, %v882_v61 }
 0x4d1   : > { %747 = vst.msk [vmem:[%s1075_s8 + $0x18] sm:$0xff] %vm156_vm1, %v553_v15  ;;  %v556_v22 = vpack.c.bf16 %v553_v15, %v553_v15 }
 0x4e8   : > { %v438_v16 = vpop.xlane.xlu1 %437 }
 0x4e9   : > { %889 = vrcp.f32 %v438_v16 }
 0x4ec   : > { %v558_v18 = vpop.permute.xlu1 %557 }
 0x4ed   : > { %v563_v20 = vsel %vm222_vm2, %v558_v18, 0 }
 0x4f3   : > { %v890_v17 = vpop.eup %889 }
 0x4f4   : > { %v440_v19 = vmul.f32 %v890_v17, %v884_v4 }
 0x4f6   : > { %744 = vst.msk [vmem:[%s1075_s8 + $0x10] sm:$0xff] %vm156_vm1, %v440_v19  ;;  %v443_v21 = vpack.c.bf16 %v440_v19, %v440_v19 }
 0x4f8   : > { %804 = vmatmul.mubr.msk.bf16.vlgmr.msra.gmra.mrb[8].mxu0 %vm156_vm1, %v443_v21 }
 0x4f9   : > { %814 = vmatpush3.bf16.msra.mxu0 %v563_v20  ;;  %815 = vmatprep.mubr.msk.bf16.mxu0 %vm956_vm0, %v955_v0 }
 0x500   : > { %816 = vmatmul.mubr.msk.bf16.vlgmr.msra.gmra.mrb[12].mxu0 %vm156_vm1, %v556_v22 }
 0x596   : > { %v373_v23 = vpop.f32.mrb[4].mxu0 }
 0x597   : > { %606 = vrot.lane.b32.xlu1 %v373_v23, %s968_s23  ;;  %v793_v24 = vpop.f32.mrb[5].mxu0 }
 0x598   : > { %v376_v25 = vpop.f32.mrb[6].mxu0 }
 0x599   : > { %v794_v26 = vpop.f32.mrb[7].mxu0 }
 0x59a   : > { %904 = shalt.err (!%p901_p3)
}
 0x59b   : > { %s905_s5 = scalar_lea.hbm %s1129_s28, 512  ;;  %s909_s8 = scalar_lea.hbm %s1186_s2, 1024 }
 0x59c   : > { %p906_p4 = scmp.ne.s32.totalorder %s1129_s28, %s905_s5  ;;  %p910_p9 = scmp.lt.u32.totalorder %s1129_s28, %s1186_s2 }
 0x59d   : > { %p911_p10 = scmp.lt.u32.totalorder %s909_s8, %s905_s5  ;;  %p913_p12 = scmp.lt.u32.totalorder %s905_s5, %s1129_s28 }
 0x59e   : > { %p907_p7 = pnand %p906_p4, %p1026_p5 }
 0x59f   : > { %p912_p11 = por %p911_p10, %p910_p9 }
 0x5a0   : > { %p908_p8 = pneg %p907_p7 }
 0x5a1   : > { %p914_p13 = por %p913_p12, %p912_p11 }
 0x5a3   : > { %p915_p0 = pnand %p914_p13, %p908_p8 }
 0x5a5   : > { %918 = shalt.err (!%p915_p0)
}
 0x5a6   : > { %s970_s17 = smov 128   ;;  %s971_s24 = smov 16   ;;  %vm618_vm3 = vcmask 130048   ;;  %vm620_vm4 = vcmask 195584   ;;  %vm622_vm5 = vcmask 261120  }
 0x5a7   : > { %819 = dma.vmem_to_hbm [thread:$0]  (%p1026_p5), %s1131_s25, 512, %s1129_s28, %s1135_s29, %s970_s17, %s970_s17, %s968_s23  }
 0x5a8   : > { %s972_s26 = smov 24   ;;  %s149_s25 = scalar_lea.vmem %s1185_s1, %s736_s22 }
 0x5cb   : > { %v486_v0 = vpop.f32.mrb[8].mxu0 }
 0x5cc   : > { %610 = vrot.lane.b32.xlu0 %v486_v0, %s971_s24  ;;  %v805_v27 = vpop.f32.mrb[9].mxu0 }
 0x5cd   : > { %v489_v28 = vpop.f32.mrb[10].mxu0 }
 0x5ce   : > { %v806_v29 = vpop.f32.mrb[11].mxu0 }
 0x5d3   : > { %v599_v30 = vpop.f32.mrb[12].mxu0 }
 0x5d4   : > { %614 = vrot.lane.b32.xlu1 %v599_v30, %s972_s26  ;;  %v817_v32 = vpop.f32.mrb[13].mxu0 }
 0x5d5   : > { %v602_v33 = vpop.f32.mrb[14].mxu0 }
 0x5d6   : > { %v818_v34 = vpop.f32.mrb[15].mxu0 }
 0x609   : > { %v607_v35 = vpop.permute.xlu1 %606 }
 0x60a   : > { %v617_v37 = vsel %vm156_vm1, %v1094_v31, %v607_v35 }
 0x63e   : > { %v611_v36 = vpop.permute.xlu0 %610 }
 0x63f   : > { %v619_v38 = vsel %vm618_vm3, %v617_v37, %v611_v36 }
 0x646   : > { %v615_v39 = vpop.permute.xlu1 %614 }
 0x647   : > { %v621_v40 = vsel %vm620_vm4, %v619_v38, %v615_v39 }
 0x648   : > { %623 = vst.msk [vmem:[%s149_s25] sm:$0xff] %vm622_vm5, %v621_v40 }
 0x649 PF: > { %p825_p5 = scmp.ge.s32.totalorder %s953_s12, 2  ;;  %s667_s27 = sand.u32 1, %s941_s9  }
 0x64a   : > { %s668_s28 = scalar_lea.sflag [#allocation3], %s667_s27 }
 0x64b   : > { %p822_p1 = pnand %p825_p5, %p1030_p6 }
 0x64d   : > { %936 = dma.done.wait (!%p822_p1), %s668_s28, 512  }
 0x64e   : > { %938 = vsyncadd (!%p822_p1), %s668_s28, 4294966784  ;;  %p13_p2 = scmp.ge.s32.totalorder %s1013_s15, 4   ;;  %s1189_s9 = smov %s945_s10 }
 0x64f   : > { %s1190_s10 = smov %s949_s11  ;;  %s1191_s11 = smov %s1024_s18 }
 0x650   : > { %s1192_s12 = smov %s1013_s15  ;;  %15 = sbr.rel (!%p13_p2) target bundleno = 3 (0x3), region = 74 }
 0x657   :  { %673 = vsyncpa [#allocation3], 1 }
 0x658   :  { %675 = vsyncpa [#allocation3 + $0x1], 1 }

// kernel: decoder_layer_forward.15
= control target key start
LH: loop header
LB: loop body
LE: loop exit
PB: predicated region body
PF: predicated region fallthrough
CT: control target
= control target key end

     0   :  { %vm35_vm0 = vcmask 261120   ;;  %v313_v3 = vmov 0.0   ;;  %vm314_vm1 = vmmov 0   ;;  %s446_s0 = inlined_call_operand.vmem [shape: f32[16,32], index: 0, kind: input, shape index: {}, may-alias: {0,5}]   ;;  %s447_s1 = inlined_call_operand.vmem [shape: f32[32,64], index: 1, kind: input, shape index: {}]   ;;  %s448_s2 = inlined_call_operand.vmem [shape: f32[1,64], index: 2, kind: input, shape index: {}]   ;;  %s449_s3 = inlined_call_operand.vmem [shape: f32[64,32], index: 3, kind: input, shape index: {}]   ;;  %s450_s4 = inlined_call_operand.vmem [shape: f32[1,32], index: 4, kind: input, shape index: {}]   ;;  %s451_s5 = inlined_call_operand.vmem [shape: f32[16,32], index: 5, kind: input, shape index: {}, may-alias: {0,5}]   ;;  %s452_s6 = inlined_call_operand.vmem [shape: f32[1,32], index: 6, kind: input, shape index: {}]   ;;  %s453_s7 = inlined_call_operand.vmem [shape: f32[1,32], index: 7, kind: input, shape index: {}]   ;;  %s454_s8 = inlined_call_operand.hbm [shape: f32[16,32], index: 8, kind: output, shape index: {}]  }
   0x1   :  { %v41_v0 = vld [vmem:[%s447_s1] sm:$0xff]  ;;  %v42_v1 = vld [vmem:[%s447_s1 + $0x8] sm:$0xff]  ;;  %v43_v2 = vld [vmem:[%s447_s1 + $0x10] sm:$0xff]  ;;  %260 = vmatprep.subr.bf16.mxu0 %v313_v3  ;;  %264 = vmatprep.mubr.msk.bf16.mxu0 %vm314_vm1, %v313_v3  ;;  %36 = vst.msk [vmem:[#allocation2] sm:$0xff] %vm35_vm0, %v313_v3 }
   0x2   :  { %v45_v4 = vpack.c.bf16 %v42_v1, %v41_v0  ;;  %v44_v5 = vld [vmem:[%s447_s1 + $0x18] sm:$0xff]  ;;  %v38_v6 = vld [vmem:[%s446_s0] sm:$0xff]  ;;  %37 = vst.msk [vmem:[#allocation2 + $0x8] sm:$0xff] %vm35_vm0, %v313_v3  ;;  %268 = vmatprep.subr.bf16.mxu1 %v313_v3  ;;  %v105_v8 = vld [vmem:[%s449_s3 + $0x8] sm:$0xff]  ;;  %276 = vmatprep.mubr.msk.bf16.mxu1 %vm314_vm1, %v313_v3 }
   0x3   :  { %v104_v7 = vld [vmem:[%s449_s3] sm:$0xff]  ;;  %v106_v9 = vld [vmem:[%s449_s3 + $0x10] sm:$0xff]  ;;  %v46_v10 = vpack.c.bf16 %v44_v5, %v43_v2  ;;  %v39_v11 = vld [vmem:[%s446_s0 + $0x8] sm:$0xff] }
   0x4   :  { %261 = vmatpush3.bf16.msra.mxu0 %v45_v4  ;;  %v112_v12 = vpack.c.bf16 %v105_v8, %v104_v7  ;;  %v107_v13 = vld [vmem:[%s449_s3 + $0x18] sm:$0xff] }
   0x5   :  { %13 = vsyncpa [#allocation4], 0  ;;  %262 = vmatprep.subr.bf16.mxu0 %v313_v3  ;;  %v113_v14 = vpack.c.bf16 %v107_v13, %v106_v9  ;;  %v40_v15 = vpack.c.bf16 %v39_v11, %v38_v6  ;;  %v108_v16 = vld [vmem:[%s449_s3 + $0x20] sm:$0xff]  ;;  %v109_v17 = vld [vmem:[%s449_s3 + $0x28] sm:$0xff]  ;;  %vm116_vm2 = vcmask 523264   ;;  %s315_s17 = smov [#allocation3]  }
   0x6   :  { %269 = vmatpush3.bf16.msra.mxu1 %v112_v12  ;;  %v114_v18 = vpack.c.bf16 %v109_v17, %v108_v16  ;;  %v110_v19 = vld [vmem:[%s449_s3 + $0x30] sm:$0xff]  ;;  %v111_v20 = vld [vmem:[%s449_s3 + $0x38] sm:$0xff]  ;;  %v246_v22 = vld [vmem:[%s448_s2] ss:$0 sm:$0xff]  ;;  %s235_s18 = sshll.u32 %s315_s17, 4  ;;  %s236_s18 = int_to_ptr.vmem [resolvable:$true] %s235_s18 }
   0x7   :  { %270 = vmatprep.subr.bf16.mxu1 %v313_v3  ;;  %v115_v21 = vpack.c.bf16 %v111_v20, %v110_v19  ;;  %v249_v40 = vld [vmem:[%s450_s4] ss:$0 sm:$0xff]  ;;  %v180_v45 = vld [vmem:[%s451_s5 + $0x8] sm:$0xff]  ;;  %s289_s1 = scalar_lea.vmem %s236_s18, 256  ;;  %p294_p1 = scmp.lt.s32.totalorder %s236_s18, %s236_s18 }
   0x8   :  { %263 = vmatpush3.bf16.msra.mxu0 %v46_v10  ;;  %v101_v32 = vld [vmem:[#allocation2] sm:$0xff]  ;;  %p290_p0 = scmp.ne.s32.totalorder %s236_s18, %s289_s1  ;;  %p295_p2 = scmp.lt.s32.totalorder %s289_s1, %s289_s1 }
   0x9   :  { %v102_v34 = vld [vmem:[#allocation2 + $0x8] sm:$0xff]  ;;  %v179_v42 = vld [vmem:[%s451_s5] sm:$0xff] }
   0xa   :  { %271 = vmatpush3.bf16.msra.mxu1 %v113_v14  ;;  %v250_v4 = vld [vmem:[%s452_s6] ss:$0 sm:$0xff]  ;;  %p296_p3 = por %p295_p2, %p294_p1 }
   0xb   :  { %265 = vmatmul.mubr.msk.bf16.vlgmr.msra.gmra.mrb[0].mxu0 %vm35_vm0, %v40_v15  ;;  %272 = vmatprep.subr.bf16.mxu1 %v313_v3  ;;  %v251_v6 = vld [vmem:[%s453_s7] ss:$0 sm:$0xff] }
   0xc   :  { %p297_p4 = pnand %p296_p3, %p290_p0 }
   0xe   :  { %273 = vmatpush3.bf16.msra.mxu1 %v114_v18 }
   0xf   :  { %274 = vmatprep.subr.bf16.mxu1 %v313_v3 }
  0x12   :  { %275 = vmatpush3.bf16.msra.mxu1 %v115_v21 }
  0xde   :  { %v92_v23 = vpop.f32.mrb[0].mxu0 }
  0xdf   :  { %v93_v24 = vadd.f32 %v246_v22, %v92_v23  ;;  %v266_v25 = vpop.f32.mrb[1].mxu0 }
  0xe0   :  { %v95_v26 = vpop.f32.mrb[2].mxu0 }
  0xe1   :  { %v96_v27 = vadd.f32 %v246_v22, %v95_v26  ;;  %v267_v28 = vpop.f32.mrb[3].mxu0  ;;  %v99_v29 = vmax.f32 %v93_v24, 0.0 }
  0xe3   :  { %v100_v30 = vmax.f32 %v96_v27, 0.0 }
  0xe5   :  { %v103_v31 = vpack.c.bf16 %v100_v30, %v99_v29 }
  0xe7   :  { %277 = vmatmul.mubr.msk.bf16.vlgmr.msra.gmra.mrb[0].mxu1 %vm116_vm2, %v103_v31 }
 0x1ba   :  { %v154_v33 = vpop.f32.mrb[0].mxu1 }
 0x1bb   :  { %v161_v35 = vadd.f32 %v154_v33, %v101_v32  ;;  %v278_v36 = vpop.f32.mrb[1].mxu1 }
 0x1bc   :  { %v157_v37 = vpop.f32.mrb[2].mxu1 }
 0x1bd   :  { %163 = vst.msk [vmem:[#allocation2] sm:$0xff] %vm35_vm0, %v161_v35  ;;  %v162_v38 = vadd.f32 %v157_v37, %v102_v34  ;;  %v279_v39 = vpop.f32.mrb[3].mxu1 }
 0x1bf   :  { %164 = vst.msk [vmem:[#allocation2 + $0x8] sm:$0xff] %vm35_vm0, %v162_v38 }
 0x1c4   :  { %v168_v41 = vld [vmem:[#allocation2] sm:$0xff] }
 0x1c5   :  { %v177_v43 = vadd.f32 %v249_v40, %v168_v41 }
 0x1c6   :  { %v169_v44 = vld [vmem:[#allocation2 + $0x8] sm:$0xff] }
 0x1c7   :  { %v181_v46 = vadd.f32 %v179_v42, %v177_v43  ;;  %v178_v47 = vadd.f32 %v249_v40, %v169_v44 }
 0x1c9   :  { %v183_v48 = vsel %vm35_vm0, %v181_v46, 0.0  ;;  %v182_v49 = vadd.f32 %v180_v45, %v178_v47 }
 0x1ca   :  { %184 = vadd.xlane.f32.xlu0 %v183_v48 }
 0x1cb   :  { %v186_v50 = vsel %vm35_vm0, %v182_v49, 0.0 }
 0x1ce   :  { %187 = vadd.xlane.f32.xlu0 %v186_v50 }
 0x257   :  { %v185_v51 = vpop.xlane.xlu0 %184 }
 0x258   :  { %v190_v52 = vmul.f32 0.03125, %v185_v51 }
 0x25a   :  { %v192_v53 = vsub.f32 %v181_v46, %v190_v52 }
 0x25b   :  { %v188_v54 = vpop.xlane.xlu0 %187 }
 0x25c   :  { %v191_v55 = vmul.f32 0.03125, %v188_v54  ;;  %v194_v56 = vmul.f32 %v192_v53, %v192_v53 }
 0x25e   :  { %v193_v57 = vsub.f32 %v182_v49, %v191_v55  ;;  %v196_v58 = vsel %vm35_vm0, %v194_v56, 0.0 }
 0x25f   :  { %197 = vadd.xlane.f32.xlu1 %v196_v58 }
 0x260   :  { %v195_v59 = vmul.f32 %v193_v57, %v193_v57 }
 0x262   :  { %v199_v60 = vsel %vm35_vm0, %v195_v59, 0.0 }
 0x263   :  { %200 = vadd.xlane.f32.xlu1 %v199_v60 }
 0x2ec   :  { %v198_v61 = vpop.xlane.xlu1 %197 }
 0x2ed   :  { %v202_v62 = vmul.f32 0.03125, %v198_v61 }
 0x2ef   :  { %v204_v63 = vadd.f32 1e-05, %v202_v62 }
 0x2f0   :  { %v201_v0 = vpop.xlane.xlu1 %200 }
 0x2f1   :  { %285 = vrsqrt.f32 %v204_v63  ;;  %v203_v1 = vmul.f32 0.03125, %v201_v0 }
 0x2f3   :  { %v205_v2 = vadd.f32 1e-05, %v203_v1 }
 0x2f5   :  { %287 = vrsqrt.f32 %v205_v2 }
 0x2fb   :  { %v286_v3 = vpop.eup %285 }
 0x2fc   :  { %v208_v5 = vmul.f32 %v286_v3, %v192_v53 }
 0x2fe   :  { %v217_v7 = vmul.f32 %v250_v4, %v208_v5 }
 0x2ff   :  { %v288_v8 = vpop.eup %287 }
 0x300   :  { %v209_v9 = vmul.f32 %v288_v8, %v193_v57  ;;  %v226_v10 = vadd.f32 %v251_v6, %v217_v7 }
 0x302   :  { %v218_v11 = vmul.f32 %v250_v4, %v209_v9  ;;  %228 = vst.msk [vmem:[#allocation3] sm:$0xff] %vm35_vm0, %v226_v10 }
 0x304   :  { %v227_v12 = vadd.f32 %v251_v6, %v218_v11 }
 0x306   :  { %229 = vst.msk [vmem:[#allocation3 + $0x8] sm:$0xff] %vm35_vm0, %v227_v12 }
 0x307   :  { %300 = shalt.err (!%p297_p4)
}
 0x308   :  { %s301_s19 = scalar_lea.hbm %s454_s8, 256 }
 0x309   :  { %p302_p5 = scmp.ne.s32.totalorder %s454_s8, %s301_s19  ;;  %p305_p6 = scmp.lt.u32.totalorder %s301_s19, %s454_s8 }
 0x30b   :  { %p307_p7 = pnand %p305_p6, %p302_p5 }
 0x30d   :  { %310 = shalt.err (!%p307_p7)
}
 0x30e   :  { %s316_s24 = smov 128   ;;  %s317_s25 = smov 8  }
 0x30f   :  { %241 = dma.vmem_to_hbm [thread:$0]  %s236_s18, 256, %s454_s8, [#allocation4], %s316_s24, %s316_s24, %s317_s25  }
 0x310   :  { %311 = dma.done.wait [#allocation4], 256  }
 0x311   :  { %312 = vsyncadd [#allocation4], 4294967040 }
 0x312   :  { %245 = vsyncpa [#allocation4], 1 }

// kernel: decoder_layer_forward.12
= control target key start
LH: loop header
LB: loop body
LE: loop exit
PB: predicated region body
PF: predicated region fallthrough
CT: control target
= control target key end

     0   :  { %vm19_vm0 = vcmask 523264   ;;  %v118_v0 = vmov 0.0   ;;  %vm119_vm1 = vmmov 0   ;;  %vm33_vm2 = vcmask 261120   ;;  %s173_s1 = inlined_call_operand.vmem [shape: f32[32,64], index: 1, kind: input, shape index: {}]   ;;  %s174_s0 = inlined_call_operand.vmem [shape: f32[16,32], index: 0, kind: input, shape index: {}]   ;;  %s175_s2 = inlined_call_operand.vmem [shape: f32[1,64], index: 2, kind: input, shape index: {}]   ;;  %s176_s3 = inlined_call_operand.vmem [shape: f32[16,64], index: 3, kind: output, shape index: {}]  }
   0x1   :  { %108 = vmatprep.subr.bf16.mxu0 %v118_v0  ;;  %v27_v1 = vld [vmem:[%s173_s1] sm:$0xff]  ;;  %v28_v2 = vld [vmem:[%s173_s1 + $0x8] sm:$0xff]  ;;  %v29_v3 = vld [vmem:[%s173_s1 + $0x10] sm:$0xff]  ;;  %112 = vmatprep.mubr.msk.bf16.mxu0 %vm119_vm1, %v118_v0  ;;  %20 = vst.msk [vmem:[#allocation2] sm:$0xff] %vm19_vm0, %v118_v0 }
   0x2   :  { %21 = vst.msk [vmem:[#allocation2 + $0x8] sm:$0xff] %vm19_vm0, %v118_v0  ;;  %v31_v4 = vpack.c.bf16 %v28_v2, %v27_v1  ;;  %v30_v5 = vld [vmem:[%s173_s1 + $0x18] sm:$0xff]  ;;  %v24_v7 = vld [vmem:[%s174_s0] sm:$0xff]  ;;  %v25_v8 = vld [vmem:[%s174_s0 + $0x8] sm:$0xff] }
   0x3   :  { %v32_v6 = vpack.c.bf16 %v30_v5, %v29_v3  ;;  %v26_v9 = vpack.c.bf16 %v25_v8, %v24_v7  ;;  %v104_v18 = vld [vmem:[%s175_s2] ss:$0 sm:$0xff] }
   0x4   :  { %109 = vmatpush3.bf16.msra.mxu0 %v31_v4 }
   0x5   :  { %110 = vmatprep.subr.bf16.mxu0 %v118_v0 }
   0x8   :  { %111 = vmatpush3.bf16.msra.mxu0 %v32_v6  ;;  %v22_v10 = vld [vmem:[#allocation2] sm:$0xff] }
   0x9   :  { %v23_v12 = vld [vmem:[#allocation2 + $0x8] sm:$0xff] }
   0xb   :  { %113 = vmatmul.mubr.msk.bf16.vlgmr.msra.gmra.mrb[0].mxu0 %vm33_vm2, %v26_v9 }
  0xde   :  { %v71_v11 = vpop.f32.mrb[0].mxu0 }
  0xdf   :  { %v78_v13 = vadd.f32 %v71_v11, %v22_v10  ;;  %v114_v14 = vpop.f32.mrb[1].mxu0 }
  0xe0   :  { %v74_v15 = vpop.f32.mrb[2].mxu0 }
  0xe1   :  { %81 = vst.msk [vmem:[#allocation2] sm:$0xff] %vm19_vm0, %v78_v13  ;;  %v79_v16 = vadd.f32 %v74_v15, %v23_v12  ;;  %v115_v17 = vpop.f32.mrb[3].mxu0 }
  0xe3   :  { %82 = vst.msk [vmem:[#allocation2 + $0x8] sm:$0xff] %vm19_vm0, %v79_v16 }
  0xe8   :  { %v86_v19 = vld [vmem:[#allocation2] sm:$0xff] }
  0xe9   :  { %v95_v20 = vadd.f32 %v104_v18, %v86_v19 }
  0xea   :  { %v87_v21 = vld [vmem:[#allocation2 + $0x8] sm:$0xff] }
  0xeb   :  { %97 = vst.msk [vmem:[%s176_s3] sm:$0xff] %vm19_vm0, %v95_v20  ;;  %v96_v22 = vadd.f32 %v104_v18, %v87_v21 }
  0xed   :  { %98 = vst.msk [vmem:[%s176_s3 + $0x8] sm:$0xff] %vm19_vm0, %v96_v22 }

// kernel: decoder_layer_forward.13
= control target key start
LH: loop header
LB: loop body
LE: loop exit
PB: predicated region body
PF: predicated region fallthrough
CT: control target
= control target key end

     0   :  { %9 = vsyncpa [#allocation3], 0  ;;  %s1236_s0 = inlined_call_operand.vmem [shape: f32[2,8,32], index: 0, kind: input, shape index: {}]   ;;  %s1237_s1 = inlined_call_operand.vmem [shape: f32[2,8,64], index: 1, kind: input, shape index: {}]   ;;  %s1238_s2 = inlined_call_operand.vmem [shape: f32[2,8,32], index: 2, kind: output, shape index: {0}]   ;;  %s1239_s3 = inlined_call_operand.hbm [shape: f32[2,4,8,8], index: 3, kind: output, shape index: {1}]  }
   0x1   :  { %11 = vsyncpa [#allocation3 + $0x1], 0  ;;  %s1043_s12 = smov 0   ;;  %s1045_s13 = smov 0  }
   0x2   :  { %s1047_s14 = smov 0   ;;  %s1049_s15 = smov 0  }
   0x3 LB: > { %s1064_s16 = sadd.s32 4294967295, %s1007_s15   ;;  %s788_s17 = sadd.s32 4294967294, %s1007_s15   ;;  %s1007_s15 = sphi %s1049_s15, %s1245_s15   ;;  %s1003_s14 = sphi %s1047_s14, %s1244_s14   ;;  %s999_s13 = sphi %s1045_s13, %s1243_s13   ;;  %s995_s12 = sphi %s1043_s12, %s1242_s12  }
   0x4   : > { %s1068_s18 = sadd.s32 1, %s1007_s15   ;;  %s102_s19 = sadd.s32 1, %s1003_s14 }
   0x5   : > { %s99_s20 = ssub.s32 %s1007_s15, %s1068_s18  ;;  %p112_p0 = scmp.ne.s32.totalorder %s1003_s14, %s999_s13 }
   0x6   : > { %p100_p1 = scmp.eq.s32.totalorder %s99_s20, 0  ;;  %p113_p2 = scmp.eq.s32.totalorder %s1064_s16, 1 }
   0x7   : > { %p118_p3 = scmp.ne.s32.totalorder %s999_s13, %s995_s12  ;;  %p119_p4 = scmp.eq.s32.totalorder %s788_s17, 1 }
   0x8   : > { %s1079_s21 = scalar_select %p100_p1, %s1003_s14, %s102_s19  }
   0x9   : > { %p1081_p5 = por %p113_p2, %p112_p0  ;;  %p1085_p6 = por %p119_p4, %p118_p3 }
   0xa   : > { %p791_p7 = scmp.ge.s32.totalorder %s1007_s15, 1  ;;  %p151_p8 = scmp.lt.s32.totalorder %s1007_s15, 3 }
   0xc   : > { %p152_p9 = pnand %p791_p7, %p151_p8 }
   0xd   : > { %p182_p10 = scmp.lt.s32.totalorder (!%p152_p9), %s1064_s16, 1  ;;  %v1009_v0 = vmov (!%p152_p9), 0.0   ;;  %vm1010_vm0 = vmmov (!%p152_p9), 0   ;;  %vm199_vm1 = vcmask (!%p152_p9), 64512   ;;  %s1011_s5 = smov (!%p152_p9), 96   ;;  %vm266_vm2 = vcmask (!%p152_p9), 1043456  }
   0xe   : > { %155 = sbr.rel (%p152_p9) target bundleno = 1453 (0x5ad), region = 28  ;;  %829 = vmatprep.subr.bf16.mxu0 (!%p152_p9), %v1009_v0  ;;  %831 = vmatprep.mubr.msk.bf16.mxu0 (!%p152_p9), %vm1010_vm0, %v1009_v0  ;;  %s1012_s6 = smov (!%p152_p9), 120  }
   0xf   : > { %835 = vmatprep.subr.bf16.mxu1 (!%p152_p9), %v1009_v0  ;;  %837 = vmatprep.mubr.msk.bf16.mxu1 (!%p152_p9), %vm1010_vm0, %v1009_v0  ;;  %s1013_s7 = smov (!%p152_p9), 112   ;;  %s1014_s8 = smov (!%p152_p9), 104  }
  0x10   : > { %s179_s9 = sand.u32 (!%p152_p9), 1, %s999_s13   ;;  %s1015_s17 = smov (!%p152_p9), 88  }
  0x11   : > { %s792_s10 = sshll.u32 (!%p152_p9), %s179_s9, 5  ;;  %s1016_s19 = smov (!%p152_p9), 72  }
  0x12   : > { %s1129_s11 = scalar_lea.vmem (!%p152_p9), [#allocation2], %s792_s10  ;;  %s1017_s20 = smov (!%p152_p9), 80  }
  0x13   : > { %s812_s26 = sshll.u32 (!%p152_p9), %s1064_s16, 9  ;;  %s690_s27 = sshll.u32 (!%p152_p9), %s1129_s11, 4  ;;  %s1184_s27 = int_to_ptr.vmem [resolvable:$true] %s690_s27 }
  0x14   : > { %s1182_s30 = scalar_lea.hbm (!%p152_p9), %s1239_s3, %s812_s26 }
  0x15   : > { %s183_s24 = scalar_select %p182_p10, %s1064_s16, 1 }
  0x16   : > { %s1019_s16 = smov [#allocation2]  }
  0x17   : > { %s1099_s25 = sshll.u32 %s183_s24, 3  ;;  %s1018_s24 = smov 8  }
  0x18   : > { %s189_s28 = scalar_lea.vmem %s1237_s1, %s1099_s25  ;;  %s185_s4 = scalar_lea.vmem %s1236_s0, %s1099_s25 }
  0x19   : > { %v195_v1 = vld [vmem:[%s189_s28] sm:$0xff] }
  0x1a   : > { %v1105_v2 = vpack.c.bf16 %v195_v1, %v195_v1  ;;  %v196_v4 = vld [vmem:[%s185_s4] sm:$0xff]  ;;  %s1188_s4 = scalar_lea.sflag [#allocation3], %s179_s9 }
  0x1b   : > { %v197_v5 = vpack.c.bf16 %v196_v4, %v196_v4 }
  0x1c   : > { %v204_v3 = vsel %vm199_vm1, %v1105_v2, 0  ;;  %261 = vrot.lane.b32.xlu1 %v1105_v2, %s1011_s5  ;;  %s945_s5 = scalar_lea.vmem %s1184_s27, 512 }
  0x1d   : > { %830 = vmatpush3.bf16.xpose.msra.mxu0 %v204_v3  ;;  %p946_p11 = scmp.ne.s32.totalorder %s1184_s27, %s945_s5 }
  0x1e   : > { %847 = vmatprep.subr.bf16.mxu0 %v1009_v0 }
  0x1f   : > { %p947_p12 = pnand %p946_p11, %p1081_p5 }
  0x20   : > { %313 = vrot.lane.b32.xlu1 %v1105_v2, %s1012_s6 }
  0x21   : > { %p948_p13 = pneg %p947_p12 }
  0x24   : > { %832 = vmatmul.mubr.msk.bf16.vlgmr.msra.gmra.mrb[0].mxu0 %vm199_vm1, %v197_v5  ;;  %426 = vrot.lane.b32.xlu1 %v1105_v2, %s1013_s7 }
  0x25   : > { %849 = vmatprep.mubr.msk.bf16.mxu0 %vm1010_vm0, %v1009_v0 }
  0x28   : > { %424 = vrot.lane.b32.xlu1 %v197_v5, %s1013_s7 }
  0x2c   : > { %539 = vrot.lane.b32.xlu1 %v1105_v2, %s1014_s8 }
  0x30   : > { %537 = vrot.lane.b32.xlu1 %v197_v5, %s1014_s8 }
  0x8e   : > { %v262_v17 = vpop.permute.xlu1 %261 }
  0x8f   : > { %v268_v18 = vsel %vm266_vm2, %v262_v17, 0 }
  0x90   : > { %836 = vmatpush3.bf16.msra.mxu1 %v268_v18 }
  0x91   : > { %841 = vmatprep.subr.bf16.mxu1 %v1009_v0 }
  0x92   : > { %v314_v21 = vpop.permute.xlu1 %313 }
  0x93   : > { %v319_v23 = vsel %vm199_vm1, %v314_v21, 0 }
  0x96   : > { %v427_v25 = vpop.permute.xlu1 %426 }
  0x97   : > { %v432_v28 = vsel %vm199_vm1, %v427_v25, 0 }
  0x9a   : > { %v425_v27 = vpop.permute.xlu1 %424 }
  0x9e   : > { %v540_v29 = vpop.permute.xlu1 %539 }
  0x9f   : > { %v545_v30 = vsel %vm199_vm1, %v540_v29, 0 }
  0xa2   : > { %v538_v31 = vpop.permute.xlu1 %537 }
  0xf7   : > { %v240_v6 = vpop.f32.mrb[0].mxu0 }
  0xf8   : > { %v246_v7 = vmul.f32 0.35355338, %v240_v6  ;;  %v833_v8 = vpop.f32.mrb[1].mxu0 }
  0xf9   : > { %v243_v9 = vpop.f32.mrb[2].mxu0 }
  0xfa   : > { %v834_v10 = vpop.f32.mrb[3].mxu0  ;;  %v247_v11 = vsel %vm199_vm1, %v246_v7, -inf }
  0xfb   : > { %248 = vmax.xlane.f32.xlu0 %v247_v11 }
 0x188   : > { %v249_v12 = vpop.xlane.xlu0 %248 }
 0x189   : > { %v250_v13 = vsub.f32 %v246_v7, %v249_v12 }
 0x18b   : > { %v251_v14 = vmul.f32 1.442695, %v250_v13 }
 0x18d   : > { %929 = vpow2.f32 %v251_v14 }
 0x197   : > { %v930_v15 = vpop.eup %929 }
 0x198   : > { %v253_v16 = vsel %vm199_vm1, %v930_v15, 0.0 }
 0x199   : > { %254 = vadd.xlane.f32.xlu0 %v253_v16 }
 0x1af   : > { %311 = vrot.lane.b32.xlu0 %v197_v5, %s1012_s6  ;;  %s949_s6 = sshll.u32 %s1019_s16, 4  ;;  %s950_s6 = int_to_ptr.vmem [resolvable:$false] %s949_s6 }
 0x1b0   : > { %s951_s7 = scalar_lea.vmem %s950_s6, 1024  ;;  %p952_p0 = scmp.lt.s32.totalorder %s1184_s27, %s950_s6 }
 0x1b1   : > { %p953_p1 = scmp.lt.s32.totalorder %s951_s7, %s945_s5 }
 0x1b3   : > { %p954_p2 = por %p953_p1, %p952_p0 }
 0x1b5   : > { %p955_p3 = pnand %p954_p2, %p948_p13 }
 0x226   : > { %v255_v19 = vpop.xlane.xlu0 %254 }
 0x227   : > { %931 = vrcp.f32 %v255_v19 }
 0x22a   : > { %v312_v26 = vpop.permute.xlu0 %311 }
 0x231   : > { %v932_v20 = vpop.eup %931 }
 0x232   : > { %v257_v22 = vmul.f32 %v932_v20, %v930_v15 }
 0x234   : > { %258 = vst.msk [vmem:[%s1129_s11] sm:$0xff] %vm199_vm1, %v257_v22  ;;  %v259_v24 = vpack.c.bf16 %v257_v22, %v257_v22 }
 0x236   : > { %838 = vmatmul.mubr.msk.bf16.vlgmr.msra.gmra.mrb[0].mxu1 %vm199_vm1, %v259_v24 }
 0x237   : > { %842 = vmatpush3.bf16.xpose.msra.mxu1 %v319_v23  ;;  %843 = vmatprep.mubr.msk.bf16.mxu1 %vm1010_vm0, %v1009_v0 }
 0x238   : > { %853 = vmatprep.subr.bf16.mxu1 %v1009_v0 }
 0x23e   : > { %844 = vmatmul.mubr.msk.bf16.vlgmr.msra.gmra.mrb[4].mxu1 %vm199_vm1, %v312_v26 }
 0x23f   : > { %854 = vmatpush3.bf16.xpose.msra.mxu1 %v432_v28  ;;  %855 = vmatprep.mubr.msk.bf16.mxu1 %vm1010_vm0, %v1009_v0 }
 0x240   : > { %865 = vmatprep.subr.bf16.mxu1 %v1009_v0 }
 0x246   : > { %856 = vmatmul.mubr.msk.bf16.vlgmr.msra.gmra.mrb[8].mxu1 %vm199_vm1, %v425_v27 }
 0x247   : > { %866 = vmatpush3.bf16.xpose.msra.mxu1 %v545_v30  ;;  %867 = vmatprep.mubr.msk.bf16.mxu1 %vm1010_vm0, %v1009_v0 }
 0x24e   : > { %868 = vmatmul.mubr.msk.bf16.vlgmr.msra.gmra.mrb[12].mxu1 %vm199_vm1, %v538_v31 }
 0x309   : > { %v1147_v32 = vpop.f32.mrb[0].mxu1 }
 0x30a   : > { %v839_v33 = vpop.f32.mrb[1].mxu1 }
 0x30b   : > { %v307_v34 = vpop.f32.mrb[2].mxu1 }
 0x30c   : > { %v840_v35 = vpop.f32.mrb[3].mxu1 }
 0x311   : > { %v355_v36 = vpop.f32.mrb[4].mxu1 }
 0x312   : > { %v361_v37 = vmul.f32 0.35355338, %v355_v36  ;;  %v845_v38 = vpop.f32.mrb[5].mxu1 }
 0x313   : > { %v358_v39 = vpop.f32.mrb[6].mxu1 }
 0x314   : > { %v846_v40 = vpop.f32.mrb[7].mxu1  ;;  %v362_v41 = vsel %vm199_vm1, %v361_v37, -inf }
 0x315   : > { %363 = vmax.xlane.f32.xlu1 %v362_v41 }
 0x319   : > { %v468_v42 = vpop.f32.mrb[8].mxu1 }
 0x31a   : > { %v474_v43 = vmul.f32 0.35355338, %v468_v42  ;;  %v857_v44 = vpop.f32.mrb[9].mxu1 }
 0x31b   : > { %v471_v45 = vpop.f32.mrb[10].mxu1 }
 0x31c   : > { %v858_v46 = vpop.f32.mrb[11].mxu1  ;;  %v475_v47 = vsel %vm199_vm1, %v474_v43, -inf }
 0x31d   : > { %476 = vmax.xlane.f32.xlu0 %v475_v47 }
 0x321   : > { %v581_v48 = vpop.f32.mrb[12].mxu1 }
 0x322   : > { %v587_v49 = vmul.f32 0.35355338, %v581_v48  ;;  %v869_v50 = vpop.f32.mrb[13].mxu1 }
 0x323   : > { %v584_v51 = vpop.f32.mrb[14].mxu1 }
 0x324   : > { %v870_v52 = vpop.f32.mrb[15].mxu1  ;;  %v588_v53 = vsel %vm199_vm1, %v587_v49, -inf }
 0x325   : > { %589 = vmax.xlane.f32.xlu1 %v588_v53 }
 0x336   : > { %376 = vrot.lane.b32.xlu1 %v1105_v2, %s1015_s17 }
 0x3a2   : > { %v364_v54 = vpop.xlane.xlu1 %363 }
 0x3a3   : > { %v365_v55 = vsub.f32 %v361_v37, %v364_v54 }
 0x3a5   : > { %v366_v56 = vmul.f32 1.442695, %v365_v55 }
 0x3a7   : > { %933 = vpow2.f32 %v366_v56 }
 0x3aa   : > { %v477_v57 = vpop.xlane.xlu0 %476 }
 0x3ab   : > { %v478_v58 = vsub.f32 %v474_v43, %v477_v57 }
 0x3ad   : > { %v479_v59 = vmul.f32 1.442695, %v478_v58 }
 0x3af   : > { %935 = vpow2.f32 %v479_v59 }
 0x3b1   : > { %v934_v60 = vpop.eup %933 }
 0x3b2   : > { %v590_v61 = vpop.xlane.xlu1 %589  ;;  %v368_v62 = vsel %vm199_vm1, %v934_v60, 0.0 }
 0x3b3   : > { %v591_v63 = vsub.f32 %v587_v49, %v590_v61  ;;  %369 = vadd.xlane.f32.xlu0 %v368_v62 }
 0x3b5   : > { %v592_v1 = vmul.f32 1.442695, %v591_v63 }
 0x3b6   : > { %v377_v3 = vpop.permute.xlu1 %376 }
 0x3b7   : > { %937 = vpow2.f32 %v592_v1  ;;  %v382_v4 = vsel %vm266_vm2, %v377_v3, 0 }
 0x3b8   : > { %848 = vmatpush3.bf16.msra.mxu0 %v382_v4 }
 0x3b9   : > { %v936_v5 = vpop.eup %935  ;;  %859 = vmatprep.subr.bf16.mxu0 %v1009_v0 }
 0x3ba   : > { %v481_v6 = vsel %vm199_vm1, %v936_v5, 0.0 }
 0x3bb   : > { %482 = vadd.xlane.f32.xlu1 %v481_v6 }
 0x3c1   : > { %v938_v7 = vpop.eup %937 }
 0x3c2   : > { %v594_v8 = vsel %vm199_vm1, %v938_v7, 0.0 }
 0x3c3   : > { %595 = vadd.xlane.f32.xlu0 %v594_v8 }
 0x3cc   : > { %602 = vrot.lane.b32.xlu1 %v1105_v2, %s1016_s19 }
 0x3d9   : > { %489 = vrot.lane.b32.xlu0 %v1105_v2, %s1017_s20 }
 0x440   : > { %v370_v9 = vpop.xlane.xlu0 %369 }
 0x441   : > { %939 = vrcp.f32 %v370_v9 }
 0x448   : > { %v483_v10 = vpop.xlane.xlu1 %482 }
 0x449   : > { %941 = vrcp.f32 %v483_v10 }
 0x44b   : > { %v940_v11 = vpop.eup %939 }
 0x44c   : > { %v372_v12 = vmul.f32 %v940_v11, %v934_v60  ;;  %v603_v17 = vpop.permute.xlu1 %602 }
 0x44d   : > { %v608_v20 = vsel %vm266_vm2, %v603_v17, 0 }
 0x44e   : > { %799 = vst.msk [vmem:[%s1129_s11 + $0x8] sm:$0xff] %vm199_vm1, %v372_v12  ;;  %v375_v13 = vpack.c.bf16 %v372_v12, %v372_v12 }
 0x450   : > { %v596_v14 = vpop.xlane.xlu0 %595  ;;  %850 = vmatmul.mubr.msk.bf16.vlgmr.msra.gmra.mrb[4].mxu0 %vm199_vm1, %v375_v13 }
 0x451   : > { %943 = vrcp.f32 %v596_v14  ;;  %861 = vmatprep.mubr.msk.bf16.mxu0 %vm1010_vm0, %v1009_v0 }
 0x453   : > { %v942_v15 = vpop.eup %941 }
 0x454   : > { %v485_v2 = vmul.f32 %v942_v15, %v936_v5  ;;  %v490_v16 = vpop.permute.xlu0 %489 }
 0x455   : > { %v495_v18 = vsel %vm266_vm2, %v490_v16, 0 }
 0x456   : > { %802 = vst.msk [vmem:[%s1129_s11 + $0x10] sm:$0xff] %vm199_vm1, %v485_v2  ;;  %860 = vmatpush3.bf16.msra.mxu0 %v495_v18  ;;  %v488_v19 = vpack.c.bf16 %v485_v2, %v485_v2 }
 0x457   : > { %871 = vmatprep.subr.bf16.mxu0 %v1009_v0 }
 0x459   : > { %862 = vmatmul.mubr.msk.bf16.vlgmr.msra.gmra.mrb[8].mxu0 %vm199_vm1, %v488_v19 }
 0x45a   : > { %872 = vmatpush3.bf16.msra.mxu0 %v608_v20  ;;  %873 = vmatprep.mubr.msk.bf16.mxu0 %vm1010_vm0, %v1009_v0 }
 0x45b   : > { %v944_v21 = vpop.eup %943 }
 0x45c   : > { %v598_v22 = vmul.f32 %v944_v21, %v938_v7 }
 0x45e   : > { %805 = vst.msk [vmem:[%s1129_s11 + $0x18] sm:$0xff] %vm199_vm1, %v598_v22  ;;  %v601_v23 = vpack.c.bf16 %v598_v22, %v598_v22 }
 0x461   : > { %874 = vmatmul.mubr.msk.bf16.vlgmr.msra.gmra.mrb[12].mxu0 %vm199_vm1, %v601_v23 }
 0x523   : > { %v418_v24 = vpop.f32.mrb[4].mxu0 }
 0x524   : > { %651 = vrot.lane.b32.xlu1 %v418_v24, %s1018_s24  ;;  %v851_v25 = vpop.f32.mrb[5].mxu0 }
 0x525   : > { %v421_v26 = vpop.f32.mrb[6].mxu0 }
 0x526   : > { %v852_v27 = vpop.f32.mrb[7].mxu0 }
 0x527   : > { %958 = shalt.err (!%p955_p3)
}
 0x528   : > { %s959_s8 = scalar_lea.hbm %s1182_s30, 512  ;;  %s963_s11 = scalar_lea.hbm %s1239_s3, 1024 }
 0x529   : > { %p960_p4 = scmp.ne.s32.totalorder %s1182_s30, %s959_s8  ;;  %p964_p9 = scmp.lt.u32.totalorder %s1182_s30, %s1239_s3 }
 0x52a   : > { %p965_p10 = scmp.lt.u32.totalorder %s963_s11, %s959_s8  ;;  %p967_p12 = scmp.lt.u32.totalorder %s959_s8, %s1182_s30 }
 0x52b   : > { %p961_p7 = pnand %p960_p4, %p1081_p5 }
 0x52c   : > { %p966_p11 = por %p965_p10, %p964_p9 }
 0x52d   : > { %p962_p8 = pneg %p961_p7 }
 0x52e   : > { %p968_p13 = por %p967_p12, %p966_p11 }
 0x530   : > { %p969_p0 = pnand %p968_p13, %p962_p8 }
 0x532   : > { %972 = shalt.err (!%p969_p0)
}
 0x533   : > { %s1020_s20 = smov 128   ;;  %v531_v0 = vpop.f32.mrb[8].mxu0  ;;  %s1021_s26 = smov 16   ;;  %vm663_vm3 = vcmask 130048   ;;  %vm665_vm4 = vcmask 195584   ;;  %vm667_vm5 = vcmask 261120  }
 0x534   : > { %877 = dma.vmem_to_hbm [thread:$0]  (%p1081_p5), %s1184_s27, 512, %s1182_s30, %s1188_s4, %s1020_s20, %s1020_s20, %s1018_s24   ;;  %v863_v28 = vpop.f32.mrb[9].mxu0 }
 0x535   : > { %655 = vrot.lane.b32.xlu0 %v531_v0, %s1021_s26  ;;  %v534_v29 = vpop.f32.mrb[10].mxu0  ;;  %s1022_s28 = smov 24   ;;  %s193_s27 = scalar_lea.vmem %s1238_s2, %s1099_s25 }
 0x536   : > { %v864_v30 = vpop.f32.mrb[11].mxu0 }
 0x537   : > { %v644_v31 = vpop.f32.mrb[12].mxu0 }
 0x538   : > { %659 = vrot.lane.b32.xlu1 %v644_v31, %s1022_s28  ;;  %v875_v33 = vpop.f32.mrb[13].mxu0 }
 0x539   : > { %v647_v34 = vpop.f32.mrb[14].mxu0 }
 0x53a   : > { %v876_v35 = vpop.f32.mrb[15].mxu0 }
 0x596   : > { %v652_v36 = vpop.permute.xlu1 %651 }
 0x597   : > { %v662_v38 = vsel %vm199_vm1, %v1147_v32, %v652_v36 }
 0x5a7   : > { %v656_v37 = vpop.permute.xlu0 %655 }
 0x5a8   : > { %v664_v39 = vsel %vm663_vm3, %v662_v38, %v656_v37 }
 0x5aa   : > { %v660_v40 = vpop.permute.xlu1 %659 }
 0x5ab   : > { %v666_v41 = vsel %vm665_vm4, %v664_v39, %v660_v40 }
 0x5ac   : > { %668 = vst.msk [vmem:[%s193_s27] sm:$0xff] %vm667_vm5, %v666_v41 }
 0x5ad PF: > { %p883_p5 = scmp.ge.s32.totalorder %s1007_s15, 2  ;;  %s712_s29 = sand.u32 1, %s995_s12  }
 0x5ae   : > { %s713_s30 = scalar_lea.sflag [#allocation3], %s712_s29 }
 0x5af   : > { %p880_p1 = pnand %p883_p5, %p1085_p6 }
 0x5b1   : > { %990 = dma.done.wait (!%p880_p1), %s713_s30, 512  }
 0x5b2   : > { %992 = vsyncadd (!%p880_p1), %s713_s30, 4294966784  ;;  %p14_p2 = scmp.ge.s32.totalorder %s1068_s18, 4   ;;  %s1242_s12 = smov %s999_s13 }
 0x5b3   : > { %s1243_s13 = smov %s1003_s14  ;;  %s1244_s14 = smov %s1079_s21 }
 0x5b4   : > { %s1245_s15 = smov %s1068_s18  ;;  %16 = sbr.rel (!%p14_p2) target bundleno = 3 (0x3), region = 81 }
 0x5bb   :  { %718 = vsyncpa [#allocation3], 1 }
 0x5bc   :  { %720 = vsyncpa [#allocation3 + $0x1], 1 }

</bundles_post_ra>
